<compile_context>
chip_gen: v6e
topology: v6e:2x2x1
jax: 0.10.0
libtpu: 0.0.40
codegen_flags: <defaults>
</compile_context>

<pallas_src>
import jax
import jax.numpy as jnp
from jax.experimental import pallas as pl
from jax.experimental.pallas import tpu as pltpu

PAD = 3          # shared halo, large enough for dilations 1, 2, 3
BN_EPS = 1e-5


def wide_focus_kernel(x_ref, w123_ref, w4_ref, b123_ref, b4_ref, o_ref,
                      xpad_scr, apad_scr):
    # x_ref    : (B, H, W*Cin)                      lane-dense input tile
    # w123_ref : (2*PAD+1, (W+2*PAD)*Cin, 3*W*Cout) per-row-offset banded weights
    # w4_ref   : (3, (W+2)*Cout, W*Cout)
    # b123_ref : (1, 3*W*Cout), b4_ref : (1, W*Cout)   folded-BN biases (per-pixel tiled)
    # o_ref    : (B, H, W*Cout)                     lane-dense output tile
    # xpad_scr : VMEM (B, H+2*PAD, (W+2*PAD)*Cin)   zero-halo padded input
    # apad_scr : VMEM (B, H+2, (W+2)*Cout)          zero-halo padded `added`
    B, H, WCin = x_ref.shape
    KX = xpad_scr.shape[-1]            # (W + 2*PAD) * Cin
    K4 = apad_scr.shape[-1]            # (W + 2) * Cout
    WC = o_ref.shape[-1]               # W * Cout
    pcin = (KX - WCin) // 2            # PAD * Cin   (left/right lane pad of xpad)
    cout = (K4 - WC) // 2              # Cout        (left/right lane pad of apad)
    BH = B * H
    f32 = jnp.float32
    wdt = w123_ref.dtype               # MXU operand dtype (f32 or bf16)

    # ---- In-kernel zero padding of the input tile (lane-dense slab).
    zrow = jnp.zeros((B, PAD, KX), f32)
    zcol = jnp.zeros((B, H, pcin), f32)
    xpad_scr[:, 0:PAD, :] = zrow
    xpad_scr[:, PAD + H:2 * PAD + H, :] = zrow
    xpad_scr[:, PAD:PAD + H, 0:pcin] = zcol
    xpad_scr[:, PAD:PAD + H, pcin + WCin:KX] = zcol
    xpad_scr[:, PAD:PAD + H, pcin:pcin + WCin] = x_ref[...].astype(f32)

    # ---- Layers 1-3 fused: one banded matmul per distinct row offset
    #      dy = r - PAD; output columns = [branch1 | branch2 | branch3].
    y = jnp.zeros((BH, 3 * WC), f32)
    for r in range(w123_ref.shape[0]):                       # 7 offsets, unrolled
        slab = xpad_scr[:, r:r + H, :].reshape(BH, KX).astype(wdt)
        y = y + jnp.dot(slab, w123_ref[r], preferred_element_type=f32)
    y = jnp.clip(y + b123_ref[...], 0.0, 6.0)                # folded BN + ReLU6
    added = y[:, 0:WC] + y[:, WC:2 * WC] + y[:, 2 * WC:3 * WC]

    # ---- Layer 4: pad `added` by one pixel in VMEM, 3 banded matmuls.
    zrow4 = jnp.zeros((B, 1, K4), f32)
    zcol4 = jnp.zeros((B, H, cout), f32)
    apad_scr[:, 0:1, :] = zrow4
    apad_scr[:, 1 + H:2 + H, :] = zrow4
    apad_scr[:, 1:1 + H, 0:cout] = zcol4
    apad_scr[:, 1:1 + H, cout + WC:K4] = zcol4
    apad_scr[:, 1:1 + H, cout:cout + WC] = added.reshape(B, H, WC)

    y4 = jnp.zeros((BH, WC), f32)
    for r in range(w4_ref.shape[0]):                         # 3 offsets, unrolled
        slab4 = apad_scr[:, r:r + H, :].reshape(BH, K4).astype(wdt)
        y4 = y4 + jnp.dot(slab4, w4_ref[r], preferred_element_type=f32)
    y4 = jnp.clip(y4 + b4_ref[...], 0.0, 6.0)

    # ---- Lane-dense store: (B*H, W*Cout) -> (B, H, W*Cout), 128-wide lanes.
    o_ref[...] = y4.reshape(B, H, WC).astype(o_ref.dtype)


def _pack_toeplitz(params, w_dim, c_in, c_out, mxu_dtype):
    """Rearrange the four 3x3 convs into per-row-offset banded matmul weights
    acting on lane-dense (W*C) rows.

      wt123[r, wp*Cin+ci, g*W*Cout + w*Cout + co]
          = sum over (ky,kx) with (ky-1)*d_g + PAD == r and
            wp == w + (kx-1)*d_g + PAD   of   W_g[ky,kx,ci,co]
      wt4 analogous with pad 1 / dilation 1.

    Zero-pad columns of the in-kernel scratch line up with (all-zero) weight
    rows, so 'same' zero padding falls out exactly.  Biases are tiled per
    output pixel column so they can be added directly to the matmul result.
    """
    w1, w2, w3, w4, b1, b2, b3, b4 = params
    W = w_dim
    WC = W * c_out
    Wp = W + 2 * PAD

    wp_i = jnp.arange(Wp)[None, :, None]
    w_i = jnp.arange(W)[None, None, :]
    kx_i = jnp.arange(3)[:, None, None]

    wt123 = jnp.zeros((2 * PAD + 1, Wp * c_in, 3 * WC), jnp.float32)
    for g, (w, d) in enumerate(((w1, 1), (w2, 2), (w3, 3))):
        # shift[kx, wp, w] = 1  iff  wp == w + (kx-1)*d + PAD
        shift = (wp_i == w_i + (kx_i - 1) * d + PAD).astype(jnp.float32)  # (3,Wp,W)
        for ky in range(3):
            r = (ky - 1) * d + PAD
            blk = jnp.einsum('xpw,xio->piwo', shift, w[ky])  # (Wp,Cin,W,Cout)
            blk = blk.reshape(Wp * c_in, WC)
            wt123 = wt123.at[r, :, g * WC:(g + 1) * WC].add(blk)

    Wp4 = W + 2
    wp4_i = jnp.arange(Wp4)[None, :, None]
    shift4 = (wp4_i == w_i + (kx_i - 1) + 1).astype(jnp.float32)          # (3,Wp4,W)
    wt4 = jnp.zeros((3, Wp4 * c_out, WC), jnp.float32)
    for ky in range(3):                                                   # r = ky
        blk = jnp.einsum('xpw,xio->piwo', shift4, w4[ky]).reshape(Wp4 * c_out, WC)
        wt4 = wt4.at[ky].set(blk)

    b123 = jnp.concatenate([jnp.tile(b1.reshape(-1), W),
                            jnp.tile(b2.reshape(-1), W),
                            jnp.tile(b3.reshape(-1), W)]).reshape(1, 3 * WC)
    b4f = jnp.tile(b4.reshape(-1), W).reshape(1, WC)
    return wt123.astype(mxu_dtype), wt4.astype(mxu_dtype), b123, b4f


def wide_focus_forward_nhwc(x_nhwc, params, *, batch_block=None,
                            mxu_dtype=jnp.float32):
    """Core path: NHWC in -> NHWC out.  mxu_dtype=jnp.bfloat16 on v6e/v7x for
    MXU throughput (loosen the comparison tolerance accordingly)."""
    N, H, W, Cin = x_nhwc.shape
    Cout = params[0].shape[-1]
    WC = W * Cout
    KX = (W + 2 * PAD) * Cin
    K4 = (W + 2) * Cout

    wt123, wt4, b123, b4f = _pack_toeplitz(params, W, Cin, Cout, mxu_dtype)

    if batch_block is None:                 # largest divisor of N that is <= 8
        batch_block = 1
        for b in range(min(N, 8), 0, -1):
            if N % b == 0:
                batch_block = b
                break
    B = batch_block
    assert N % B == 0, "batch_block must divide N"

    x2 = x_nhwc.reshape(N, H, W * Cin)      # free flatten of trailing dims

    flops = 2 * N * H * ((2 * PAD + 1) * KX * 3 * WC + 3 * K4 * WC)
    bytes_accessed = (x2.size * x2.dtype.itemsize
                      + N * H * WC * 4
                      + wt123.size * wt123.dtype.itemsize
                      + wt4.size * wt4.dtype.itemsize
                      + (b123.size + b4f.size) * 4)

    out_flat = pl.pallas_call(
        wide_focus_kernel,
        out_shape=jax.ShapeDtypeStruct((N, H, WC), jnp.float32),
        grid_spec=pltpu.PrefetchScalarGridSpec(
            num_scalar_prefetch=0,
            grid=(N // B,),
            in_specs=[
                pl.BlockSpec((B, H, W * Cin), lambda n: (n, 0, 0)),
                pl.BlockSpec(wt123.shape, lambda n: (0, 0, 0)),
                pl.BlockSpec(wt4.shape, lambda n: (0, 0, 0)),
                pl.BlockSpec(b123.shape, lambda n: (0, 0)),
                pl.BlockSpec(b4f.shape, lambda n: (0, 0)),
            ],
            out_specs=pl.BlockSpec((B, H, WC), lambda n: (n, 0, 0)),
            scratch_shapes=[
                pltpu.VMEM((B, H + 2 * PAD, KX), jnp.float32),
                pltpu.VMEM((B, H + 2, K4), jnp.float32),
            ],
        ),
        compiler_params=pltpu.CompilerParams(
            dimension_semantics=("parallel",)),
        cost_estimate=pl.CostEstimate(flops=flops, transcendentals=0,
                                      bytes_accessed=bytes_accessed),
    )(x2, wt123, wt4, b123, b4f)

    return out_flat.reshape(N, H, W, Cout)


def wide_focus_forward(x_nchw, params, **kw):
    """PyTorch-layout wrapper: [N, Cin, H, W] -> [N, Cout, H, W]."""
    x = jnp.transpose(x_nchw, (0, 2, 3, 1))              # NHWC
    out = wide_focus_forward_nhwc(x, params, **kw)
    return jnp.transpose(out, (0, 3, 1, 2))              # back to NCHW


def init_params(key, c_in, c_out):
    """Deterministic synthetic Conv+BN params; BN folded into (weight, bias)."""
    def conv_bn(k, ci, co):
        kw, kg, kb, km, kv = jax.random.split(k, 5)
        w = 0.1 * jax.random.normal(kw, (3, 3, ci, co), jnp.float32)   # HWIO
        gamma = 1.0 + 0.1 * jax.random.normal(kg, (co,), jnp.float32)
        beta = 0.1 * jax.random.normal(kb, (co,), jnp.float32)
        run_mean = 0.1 * jax.random.normal(km, (co,), jnp.float32)
        run_var = jnp.abs(jax.random.normal(kv, (co,), jnp.float32)) + 0.5
        scale = gamma / jnp.sqrt(run_var + BN_EPS)
        w_folded = w * scale                                           # per-out-channel
        b_folded = (beta - run_mean * scale).reshape(1, co)
        return w_folded, b_folded

    k1, k2, k3, k4 = jax.random.split(key, 4)
    w1, b1 = conv_bn(k1, c_in, c_out)
    w2, b2 = conv_bn(k2, c_in, c_out)
    w3, b3 = conv_bn(k3, c_in, c_out)
    w4, b4 = conv_bn(k4, c_out, c_out)
    return w1, w2, w3, w4, b1, b2, b3, b4


def ref_forward(x_nchw, params):
    """Plain-JAX reference (same folded-BN math) for the correctness check."""
    w1, w2, w3, w4, b1, b2, b3, b4 = params
    x = jnp.transpose(x_nchw, (0, 2, 3, 1))

    def conv(x, w, b, d):
        y = jax.lax.conv_general_dilated(
            x, w, window_strides=(1, 1), padding=[(d, d), (d, d)],
            rhs_dilation=(d, d),
            dimension_numbers=('NHWC', 'HWIO', 'NHWC'))
        return jnp.clip(y + b.reshape(1, 1, 1, -1), 0.0, 6.0)

    added = conv(x, w1, b1, 1) + conv(x, w2, b2, 2) + conv(x, w3, b3, 3)
    out = conv(added, w4, b4, 1)
    return jnp.transpose(out, (0, 3, 1, 2))


if __name__ == "__main__":
    key = jax.random.PRNGKey(0)
    k_x, k_p = jax.random.split(key)

    N, C_IN, H, W = 2, 4, 16, 16
    C_OUT = 8

    x = jax.random.normal(k_x, (N, C_IN, H, W), jnp.float32)
    params = init_params(k_p, C_IN, C_OUT)

    out = wide_focus_forward(x, params)
    out = jax.block_until_ready(out)

    ref = ref_forward(x, params)
    assert out.shape == (N, C_OUT, H, W)
    max_err = float(jnp.max(jnp.abs(out - ref)))
    assert jnp.allclose(out, ref, atol=1e-3, rtol=1e-3), \
        f"max abs err = {max_err}"

    print("KERNEL_OK")
</pallas_src>

<mosaic_0001>
module attributes {stable_mosaic.version = 11 : i64} {
  func.func @wide_focus_kernel(%arg0: i32, %arg1: memref<2x16x64xf32, #tpu.memory_space<vmem>>, %arg2: memref<7x88x384xf32, #tpu.memory_space<vmem>>, %arg3: memref<3x144x128xf32, #tpu.memory_space<vmem>>, %arg4: memref<1x384xf32, #tpu.memory_space<vmem>>, %arg5: memref<1x128xf32, #tpu.memory_space<vmem>>, %arg6: memref<2x16x128xf32, #tpu.memory_space<vmem>>, %arg7: memref<2x22x88xf32, #tpu.memory_space<vmem>>, %arg8: memref<2x18x144xf32, #tpu.memory_space<vmem>>) attributes {dimension_semantics = [#tpu.dimension_semantics<parallel>], iteration_bounds = array<i64: 1>, scalar_prefetch = 0 : i64, scratch_operands = 2 : i64, tpu.core_type = #tpu.core_type<tc>, window_params = [{transform_indices = @transform_0, window_bounds = array<i64: 2, 16, 64>}, {pipeline_mode = #tpu.pipeline_mode<synchronous>, transform_indices = @transform_1, window_bounds = array<i64: 7, 88, 384>}, {pipeline_mode = #tpu.pipeline_mode<synchronous>, transform_indices = @transform_2, window_bounds = array<i64: 3, 144, 128>}, {pipeline_mode = #tpu.pipeline_mode<synchronous>, transform_indices = @transform_3, window_bounds = array<i64: 1, 384>}, {pipeline_mode = #tpu.pipeline_mode<synchronous>, transform_indices = @transform_4, window_bounds = array<i64: 1, 128>}, {transform_indices = @transform_5, window_bounds = array<i64: 2, 16, 128>}]} {
    %cst = arith.constant 0.000000e+00 : f32
    %0 = vector.broadcast %cst : f32 to vector<2x3x88xf32>
    %cst_0 = arith.constant 0.000000e+00 : f32
    %1 = vector.broadcast %cst_0 : f32 to vector<2x16x12xf32>
    %c0 = arith.constant 0 : index
    %c0_1 = arith.constant 0 : index
    %c0_2 = arith.constant 0 : index
    %2 = vector.load %arg7[%c0, %c0_1, %c0_2] : memref<2x22x88xf32, #tpu.memory_space<vmem>>, vector<2x3x88xf32>
    tpu.vector_store %arg7[%c0, %c0_1, %c0_2], %0 {strides = array<i32>} : memref<2x22x88xf32, #tpu.memory_space<vmem>>, vector<2x3x88xf32>,
    %c0_3 = arith.constant 0 : index
    %c19 = arith.constant 19 : index
    %c0_4 = arith.constant 0 : index
    %3 = vector.load %arg7[%c0_3, %c19, %c0_4] : memref<2x22x88xf32, #tpu.memory_space<vmem>>, vector<2x3x88xf32>
    tpu.vector_store %arg7[%c0_3, %c19, %c0_4], %0 {strides = array<i32>} : memref<2x22x88xf32, #tpu.memory_space<vmem>>, vector<2x3x88xf32>,
    %c0_5 = arith.constant 0 : index
    %c3 = arith.constant 3 : index
    %c0_6 = arith.constant 0 : index
    %4 = vector.load %arg7[%c0_5, %c3, %c0_6] : memref<2x22x88xf32, #tpu.memory_space<vmem>>, vector<2x16x12xf32>
    tpu.vector_store %arg7[%c0_5, %c3, %c0_6], %1 {strides = array<i32>} : memref<2x22x88xf32, #tpu.memory_space<vmem>>, vector<2x16x12xf32>,
    %c0_7 = arith.constant 0 : index
    %c3_8 = arith.constant 3 : index
    %c76 = arith.constant 76 : index
    %5 = vector.load %arg7[%c0_7, %c3_8, %c76] : memref<2x22x88xf32, #tpu.memory_space<vmem>>, vector<2x16x12xf32>
    tpu.vector_store %arg7[%c0_7, %c3_8, %c76], %1 {strides = array<i32>} : memref<2x22x88xf32, #tpu.memory_space<vmem>>, vector<2x16x12xf32>,
    %c0_9 = arith.constant 0 : index
    %c0_10 = arith.constant 0 : index
    %c0_11 = arith.constant 0 : index
    %6 = vector.load %arg1[%c0_9, %c0_10, %c0_11] : memref<2x16x64xf32, #tpu.memory_space<vmem>>, vector<2x16x64xf32>
    %c0_12 = arith.constant 0 : index
    %c3_13 = arith.constant 3 : index
    %c12 = arith.constant 12 : index
    %7 = vector.load %arg7[%c0_12, %c3_13, %c12] : memref<2x22x88xf32, #tpu.memory_space<vmem>>, vector<2x16x64xf32>
    tpu.vector_store %arg7[%c0_12, %c3_13, %c12], %6 {strides = array<i32>} : memref<2x22x88xf32, #tpu.memory_space<vmem>>, vector<2x16x64xf32>,
    %cst_14 = arith.constant 0.000000e+00 : f32
    %8 = vector.broadcast %cst_14 : f32 to vector<32x384xf32>
    %c0_15 = arith.constant 0 : index
    %c0_16 = arith.constant 0 : index
    %c0_17 = arith.constant 0 : index
    %9 = vector.load %arg7[%c0_15, %c0_16, %c0_17] : memref<2x22x88xf32, #tpu.memory_space<vmem>>, vector<2x16x88xf32>
    %10 = vector.shape_cast %9 : vector<2x16x88xf32> to vector<32x88xf32>
    %c0_18 = arith.constant 0 : index
    %c0_19 = arith.constant 0 : index
    %c0_20 = arith.constant 0 : index
    %11 = vector.load %arg2[%c0_18, %c0_19, %c0_20] : memref<7x88x384xf32, #tpu.memory_space<vmem>>, vector<1x88x384xf32>
    %12 = vector.shape_cast %11 : vector<1x88x384xf32> to vector<88x384xf32>
    %cst_21 = arith.constant dense<0.000000e+00> : vector<32x384xf32>
    %13 = tpu.matmul %10, %12, %cst_21 {dimension_numbers = #tpu.dot_dimension_numbers<[1], [0], [0], [1], [0, 0, 1, 1], [], []>} : vector<32x88xf32>, vector<88x384xf32>, vector<32x384xf32> -> vector<32x384xf32>
    %14 = arith.addf %8, %13 : vector<32x384xf32>
    %c0_22 = arith.constant 0 : index
    %c1 = arith.constant 1 : index
    %c0_23 = arith.constant 0 : index
    %15 = vector.load %arg7[%c0_22, %c1, %c0_23] : memref<2x22x88xf32, #tpu.memory_space<vmem>>, vector<2x16x88xf32>
    %16 = vector.shape_cast %15 : vector<2x16x88xf32> to vector<32x88xf32>
    %c1_24 = arith.constant 1 : index
    %c0_25 = arith.constant 0 : index
    %c0_26 = arith.constant 0 : index
    %17 = vector.load %arg2[%c1_24, %c0_25, %c0_26] : memref<7x88x384xf32, #tpu.memory_space<vmem>>, vector<1x88x384xf32>
    %18 = vector.shape_cast %17 : vector<1x88x384xf32> to vector<88x384xf32>
    %cst_27 = arith.constant dense<0.000000e+00> : vector<32x384xf32>
    %19 = tpu.matmul %16, %18, %cst_27 {dimension_numbers = #tpu.dot_dimension_numbers<[1], [0], [0], [1], [0, 0, 1, 1], [], []>} : vector<32x88xf32>, vector<88x384xf32>, vector<32x384xf32> -> vector<32x384xf32>
    %20 = arith.addf %14, %19 : vector<32x384xf32>
    %c0_28 = arith.constant 0 : index
    %c2 = arith.constant 2 : index
    %c0_29 = arith.constant 0 : index
    %21 = vector.load %arg7[%c0_28, %c2, %c0_29] : memref<2x22x88xf32, #tpu.memory_space<vmem>>, vector<2x16x88xf32>
    %22 = vector.shape_cast %21 : vector<2x16x88xf32> to vector<32x88xf32>
    %c2_30 = arith.constant 2 : index
    %c0_31 = arith.constant 0 : index
    %c0_32 = arith.constant 0 : index
    %23 = vector.load %arg2[%c2_30, %c0_31, %c0_32] : memref<7x88x384xf32, #tpu.memory_space<vmem>>, vector<1x88x384xf32>
    %24 = vector.shape_cast %23 : vector<1x88x384xf32> to vector<88x384xf32>
    %cst_33 = arith.constant dense<0.000000e+00> : vector<32x384xf32>
    %25 = tpu.matmul %22, %24, %cst_33 {dimension_numbers = #tpu.dot_dimension_numbers<[1], [0], [0], [1], [0, 0, 1, 1], [], []>} : vector<32x88xf32>, vector<88x384xf32>, vector<32x384xf32> -> vector<32x384xf32>
    %26 = arith.addf %20, %25 : vector<32x384xf32>
    %c0_34 = arith.constant 0 : index
    %c3_35 = arith.constant 3 : index
    %c0_36 = arith.constant 0 : index
    %27 = vector.load %arg7[%c0_34, %c3_35, %c0_36] : memref<2x22x88xf32, #tpu.memory_space<vmem>>, vector<2x16x88xf32>
    %28 = vector.shape_cast %27 : vector<2x16x88xf32> to vector<32x88xf32>
    %c3_37 = arith.constant 3 : index
    %c0_38 = arith.constant 0 : index
    %c0_39 = arith.constant 0 : index
    %29 = vector.load %arg2[%c3_37, %c0_38, %c0_39] : memref<7x88x384xf32, #tpu.memory_space<vmem>>, vector<1x88x384xf32>
    %30 = vector.shape_cast %29 : vector<1x88x384xf32> to vector<88x384xf32>
    %cst_40 = arith.constant dense<0.000000e+00> : vector<32x384xf32>
    %31 = tpu.matmul %28, %30, %cst_40 {dimension_numbers = #tpu.dot_dimension_numbers<[1], [0], [0], [1], [0, 0, 1, 1], [], []>} : vector<32x88xf32>, vector<88x384xf32>, vector<32x384xf32> -> vector<32x384xf32>
    %32 = arith.addf %26, %31 : vector<32x384xf32>
    %c0_41 = arith.constant 0 : index
    %c4 = arith.constant 4 : index
    %c0_42 = arith.constant 0 : index
    %33 = vector.load %arg7[%c0_41, %c4, %c0_42] : memref<2x22x88xf32, #tpu.memory_space<vmem>>, vector<2x16x88xf32>
    %34 = vector.shape_cast %33 : vector<2x16x88xf32> to vector<32x88xf32>
    %c4_43 = arith.constant 4 : index
    %c0_44 = arith.constant 0 : index
    %c0_45 = arith.constant 0 : index
    %35 = vector.load %arg2[%c4_43, %c0_44, %c0_45] : memref<7x88x384xf32, #tpu.memory_space<vmem>>, vector<1x88x384xf32>
    %36 = vector.shape_cast %35 : vector<1x88x384xf32> to vector<88x384xf32>
    %cst_46 = arith.constant dense<0.000000e+00> : vector<32x384xf32>
    %37 = tpu.matmul %34, %36, %cst_46 {dimension_numbers = #tpu.dot_dimension_numbers<[1], [0], [0], [1], [0, 0, 1, 1], [], []>} : vector<32x88xf32>, vector<88x384xf32>, vector<32x384xf32> -> vector<32x384xf32>
    %38 = arith.addf %32, %37 : vector<32x384xf32>
    %c0_47 = arith.constant 0 : index
    %c5 = arith.constant 5 : index
    %c0_48 = arith.constant 0 : index
    %39 = vector.load %arg7[%c0_47, %c5, %c0_48] : memref<2x22x88xf32, #tpu.memory_space<vmem>>, vector<2x16x88xf32>
    %40 = vector.shape_cast %39 : vector<2x16x88xf32> to vector<32x88xf32>
    %c5_49 = arith.constant 5 : index
    %c0_50 = arith.constant 0 : index
    %c0_51 = arith.constant 0 : index
    %41 = vector.load %arg2[%c5_49, %c0_50, %c0_51] : memref<7x88x384xf32, #tpu.memory_space<vmem>>, vector<1x88x384xf32>
    %42 = vector.shape_cast %41 : vector<1x88x384xf32> to vector<88x384xf32>
    %cst_52 = arith.constant dense<0.000000e+00> : vector<32x384xf32>
    %43 = tpu.matmul %40, %42, %cst_52 {dimension_numbers = #tpu.dot_dimension_numbers<[1], [0], [0], [1], [0, 0, 1, 1], [], []>} : vector<32x88xf32>, vector<88x384xf32>, vector<32x384xf32> -> vector<32x384xf32>
    %44 = arith.addf %38, %43 : vector<32x384xf32>
    %c0_53 = arith.constant 0 : index
    %c6 = arith.constant 6 : index
    %c0_54 = arith.constant 0 : index
    %45 = vector.load %arg7[%c0_53, %c6, %c0_54] : memref<2x22x88xf32, #tpu.memory_space<vmem>>, vector<2x16x88xf32>
    %46 = vector.shape_cast %45 : vector<2x16x88xf32> to vector<32x88xf32>
    %c6_55 = arith.constant 6 : index
    %c0_56 = arith.constant 0 : index
    %c0_57 = arith.constant 0 : index
    %47 = vector.load %arg2[%c6_55, %c0_56, %c0_57] : memref<7x88x384xf32, #tpu.memory_space<vmem>>, vector<1x88x384xf32>
    %48 = vector.shape_cast %47 : vector<1x88x384xf32> to vector<88x384xf32>
    %cst_58 = arith.constant dense<0.000000e+00> : vector<32x384xf32>
    %49 = tpu.matmul %46, %48, %cst_58 {dimension_numbers = #tpu.dot_dimension_numbers<[1], [0], [0], [1], [0, 0, 1, 1], [], []>} : vector<32x88xf32>, vector<88x384xf32>, vector<32x384xf32> -> vector<32x384xf32>
    %50 = arith.addf %44, %49 : vector<32x384xf32>
    %c0_59 = arith.constant 0 : index
    %c0_60 = arith.constant 0 : index
    %51 = vector.load %arg4[%c0_59, %c0_60] : memref<1x384xf32, #tpu.memory_space<vmem>>, vector<1x384xf32>
    %52 = vector.broadcast %51 : vector<1x384xf32> to vector<32x384xf32>
    %53 = arith.addf %50, %52 : vector<32x384xf32>
    %cst_61 = arith.constant 0.000000e+00 : f32
    %cst_62 = arith.constant 6.000000e+00 : f32
    %54 = vector.broadcast %cst_61 : f32 to vector<32x384xf32>
    %55 = arith.maximumf %54, %53 : vector<32x384xf32>
    %56 = vector.broadcast %cst_62 : f32 to vector<32x384xf32>
    %57 = arith.minimumf %56, %55 : vector<32x384xf32>
    %58 = vector.extract_strided_slice %57 {offsets = [0, 0], sizes = [32, 128], strides = [1, 1]} : vector<32x384xf32> to vector<32x128xf32>
    %59 = vector.extract_strided_slice %57 {offsets = [0, 128], sizes = [32, 128], strides = [1, 1]} : vector<32x384xf32> to vector<32x128xf32>
    %60 = arith.addf %58, %59 : vector<32x128xf32>
    %61 = vector.extract_strided_slice %57 {offsets = [0, 256], sizes = [32, 128], strides = [1, 1]} : vector<32x384xf32> to vector<32x128xf32>
    %62 = arith.addf %60, %61 : vector<32x128xf32>
    %cst_63 = arith.constant 0.000000e+00 : f32
    %63 = vector.broadcast %cst_63 : f32 to vector<2x1x144xf32>
    %cst_64 = arith.constant 0.000000e+00 : f32
    %64 = vector.broadcast %cst_64 : f32 to vector<2x16x8xf32>
    %c0_65 = arith.constant 0 : index
    %c0_66 = arith.constant 0 : index
    %c0_67 = arith.constant 0 : index
    %65 = vector.load %arg8[%c0_65, %c0_66, %c0_67] : memref<2x18x144xf32, #tpu.memory_space<vmem>>, vector<2x1x144xf32>
    tpu.vector_store %arg8[%c0_65, %c0_66, %c0_67], %63 {strides = array<i32>} : memref<2x18x144xf32, #tpu.memory_space<vmem>>, vector<2x1x144xf32>,
    %c0_68 = arith.constant 0 : index
    %c17 = arith.constant 17 : index
    %c0_69 = arith.constant 0 : index
    %66 = vector.load %arg8[%c0_68, %c17, %c0_69] : memref<2x18x144xf32, #tpu.memory_space<vmem>>, vector<2x1x144xf32>
    tpu.vector_store %arg8[%c0_68, %c17, %c0_69], %63 {strides = array<i32>} : memref<2x18x144xf32, #tpu.memory_space<vmem>>, vector<2x1x144xf32>,
    %c0_70 = arith.constant 0 : index
    %c1_71 = arith.constant 1 : index
    %c0_72 = arith.constant 0 : index
    %67 = vector.load %arg8[%c0_70, %c1_71, %c0_72] : memref<2x18x144xf32, #tpu.memory_space<vmem>>, vector<2x16x8xf32>
    tpu.vector_store %arg8[%c0_70, %c1_71, %c0_72], %64 {strides = array<i32>} : memref<2x18x144xf32, #tpu.memory_space<vmem>>, vector<2x16x8xf32>,
    %c0_73 = arith.constant 0 : index
    %c1_74 = arith.constant 1 : index
    %c136 = arith.constant 136 : index
    %68 = vector.load %arg8[%c0_73, %c1_74, %c136] : memref<2x18x144xf32, #tpu.memory_space<vmem>>, vector<2x16x8xf32>
    tpu.vector_store %arg8[%c0_73, %c1_74, %c136], %64 {strides = array<i32>} : memref<2x18x144xf32, #tpu.memory_space<vmem>>, vector<2x16x8xf32>,
    %69 = vector.shape_cast %62 : vector<32x128xf32> to vector<2x16x128xf32>
    %c0_75 = arith.constant 0 : index
    %c1_76 = arith.constant 1 : index
    %c8 = arith.constant 8 : index
    %70 = vector.load %arg8[%c0_75, %c1_76, %c8] : memref<2x18x144xf32, #tpu.memory_space<vmem>>, vector<2x16x128xf32>
    tpu.vector_store %arg8[%c0_75, %c1_76, %c8], %69 {strides = array<i32>} : memref<2x18x144xf32, #tpu.memory_space<vmem>>, vector<2x16x128xf32>,
    %cst_77 = arith.constant 0.000000e+00 : f32
    %71 = vector.broadcast %cst_77 : f32 to vector<32x128xf32>
    %c0_78 = arith.constant 0 : index
    %c0_79 = arith.constant 0 : index
    %c0_80 = arith.constant 0 : index
    %72 = vector.load %arg8[%c0_78, %c0_79, %c0_80] : memref<2x18x144xf32, #tpu.memory_space<vmem>>, vector<2x16x144xf32>
    %73 = vector.shape_cast %72 : vector<2x16x144xf32> to vector<32x144xf32>
    %c0_81 = arith.constant 0 : index
    %c0_82 = arith.constant 0 : index
    %c0_83 = arith.constant 0 : index
    %74 = vector.load %arg3[%c0_81, %c0_82, %c0_83] : memref<3x144x128xf32, #tpu.memory_space<vmem>>, vector<1x144x128xf32>
    %75 = vector.shape_cast %74 : vector<1x144x128xf32> to vector<144x128xf32>
    %cst_84 = arith.constant dense<0.000000e+00> : vector<32x128xf32>
    %76 = tpu.matmul %73, %75, %cst_84 {dimension_numbers = #tpu.dot_dimension_numbers<[1], [0], [0], [1], [0, 0, 1, 1], [], []>} : vector<32x144xf32>, vector<144x128xf32>, vector<32x128xf32> -> vector<32x128xf32>
    %77 = arith.addf %71, %76 : vector<32x128xf32>
    %c0_85 = arith.constant 0 : index
    %c1_86 = arith.constant 1 : index
    %c0_87 = arith.constant 0 : index
    %78 = vector.load %arg8[%c0_85, %c1_86, %c0_87] : memref<2x18x144xf32, #tpu.memory_space<vmem>>, vector<2x16x144xf32>
    %79 = vector.shape_cast %78 : vector<2x16x144xf32> to vector<32x144xf32>
    %c1_88 = arith.constant 1 : index
    %c0_89 = arith.constant 0 : index
    %c0_90 = arith.constant 0 : index
    %80 = vector.load %arg3[%c1_88, %c0_89, %c0_90] : memref<3x144x128xf32, #tpu.memory_space<vmem>>, vector<1x144x128xf32>
    %81 = vector.shape_cast %80 : vector<1x144x128xf32> to vector<144x128xf32>
    %cst_91 = arith.constant dense<0.000000e+00> : vector<32x128xf32>
    %82 = tpu.matmul %79, %81, %cst_91 {dimension_numbers = #tpu.dot_dimension_numbers<[1], [0], [0], [1], [0, 0, 1, 1], [], []>} : vector<32x144xf32>, vector<144x128xf32>, vector<32x128xf32> -> vector<32x128xf32>
    %83 = arith.addf %77, %82 : vector<32x128xf32>
    %c0_92 = arith.constant 0 : index
    %c2_93 = arith.constant 2 : index
    %c0_94 = arith.constant 0 : index
    %84 = vector.load %arg8[%c0_92, %c2_93, %c0_94] : memref<2x18x144xf32, #tpu.memory_space<vmem>>, vector<2x16x144xf32>
    %85 = vector.shape_cast %84 : vector<2x16x144xf32> to vector<32x144xf32>
    %c2_95 = arith.constant 2 : index
    %c0_96 = arith.constant 0 : index
    %c0_97 = arith.constant 0 : index
    %86 = vector.load %arg3[%c2_95, %c0_96, %c0_97] : memref<3x144x128xf32, #tpu.memory_space<vmem>>, vector<1x144x128xf32>
    %87 = vector.shape_cast %86 : vector<1x144x128xf32> to vector<144x128xf32>
    %cst_98 = arith.constant dense<0.000000e+00> : vector<32x128xf32>
    %88 = tpu.matmul %85, %87, %cst_98 {dimension_numbers = #tpu.dot_dimension_numbers<[1], [0], [0], [1], [0, 0, 1, 1], [], []>} : vector<32x144xf32>, vector<144x128xf32>, vector<32x128xf32> -> vector<32x128xf32>
    %89 = arith.addf %83, %88 : vector<32x128xf32>
    %c0_99 = arith.constant 0 : index
    %c0_100 = arith.constant 0 : index
    %90 = vector.load %arg5[%c0_99, %c0_100] : memref<1x128xf32, #tpu.memory_space<vmem>>, vector<1x128xf32>
    %91 = vector.broadcast %90 : vector<1x128xf32> to vector<32x128xf32>
    %92 = arith.addf %89, %91 : vector<32x128xf32>
    %cst_101 = arith.constant 0.000000e+00 : f32
    %cst_102 = arith.constant 6.000000e+00 : f32
    %93 = vector.broadcast %cst_101 : f32 to vector<32x128xf32>
    %94 = arith.maximumf %93, %92 : vector<32x128xf32>
    %95 = vector.broadcast %cst_102 : f32 to vector<32x128xf32>
    %96 = arith.minimumf %95, %94 : vector<32x128xf32>
    %97 = vector.shape_cast %96 : vector<32x128xf32> to vector<2x16x128xf32>
    %c0_103 = arith.constant 0 : index
    %c0_104 = arith.constant 0 : index
    %c0_105 = arith.constant 0 : index
    %98 = vector.load %arg6[%c0_103, %c0_104, %c0_105] : memref<2x16x128xf32, #tpu.memory_space<vmem>>, vector<2x16x128xf32>
    tpu.vector_store %arg6[%c0_103, %c0_104, %c0_105], %97 {strides = array<i32>} : memref<2x16x128xf32, #tpu.memory_space<vmem>>, vector<2x16x128xf32>,
    return
  }
  func.func @transform_0(%arg0: i32) -> (i32, i32, i32) {
    %c0_i32 = arith.constant 0 : i32
    %c0_i32_0 = arith.constant 0 : i32
    %c0_i32_1 = arith.constant 0 : i32
    return %arg0, %c0_i32, %c0_i32_0 : i32, i32, i32
  }
  func.func @transform_1(%arg0: i32) -> (i32, i32, i32) {
    %c0_i32 = arith.constant 0 : i32
    %c0_i32_0 = arith.constant 0 : i32
    %c0_i32_1 = arith.constant 0 : i32
    %c0_i32_2 = arith.constant 0 : i32
    return %c0_i32, %c0_i32_0, %c0_i32_1 : i32, i32, i32
  }
  func.func @transform_2(%arg0: i32) -> (i32, i32, i32) {
    %c0_i32 = arith.constant 0 : i32
    %c0_i32_0 = arith.constant 0 : i32
    %c0_i32_1 = arith.constant 0 : i32
    %c0_i32_2 = arith.constant 0 : i32
    return %c0_i32, %c0_i32_0, %c0_i32_1 : i32, i32, i32
  }
  func.func @transform_3(%arg0: i32) -> (i32, i32) {
    %c0_i32 = arith.constant 0 : i32
    %c0_i32_0 = arith.constant 0 : i32
    %c0_i32_1 = arith.constant 0 : i32
    return %c0_i32, %c0_i32_0 : i32, i32
  }
  func.func @transform_4(%arg0: i32) -> (i32, i32) {
    %c0_i32 = arith.constant 0 : i32
    %c0_i32_0 = arith.constant 0 : i32
    %c0_i32_1 = arith.constant 0 : i32
    return %c0_i32, %c0_i32_0 : i32, i32
  }
  func.func @transform_5(%arg0: i32) -> (i32, i32, i32) {
    %c0_i32 = arith.constant 0 : i32
    %c0_i32_0 = arith.constant 0 : i32
    %c0_i32_1 = arith.constant 0 : i32
    return %arg0, %c0_i32, %c0_i32_0 : i32, i32, i32
  }
}

</mosaic_0001>

<bundles_post_ra>
// kernel: tpu_custom_call.1
= control target key start
LH: loop header
LB: loop body
LE: loop exit
PB: predicated region body
PF: predicated region fallthrough
CT: control target
= control target key end

     0   :  { %10 = vsyncpa [#allocation5], 0  ;;  %s3423_s0 = inlined_call_operand.hbm [shape: f32[2,16,64], index: 0, kind: input, shape index: {}]   ;;  %s3424_s1 = inlined_call_operand.hbm [shape: f32[7,88,384], index: 1, kind: input, shape index: {}]   ;;  %s3425_s2 = inlined_call_operand.hbm [shape: f32[3,144,128], index: 2, kind: input, shape index: {}]   ;;  %s3426_s3 = inlined_call_operand.vmem [shape: f32[1,384], index: 3, kind: input, shape index: {}]   ;;  %s3427_s4 = inlined_call_operand.vmem [shape: f32[1,128], index: 4, kind: input, shape index: {}]   ;;  %s3428_s5 = inlined_call_operand.hbm [shape: f32[2,16,128], index: 5, kind: output, shape index: {}]  }
   0x1   :  { %11 = vsyncpa [#allocation8], 0 }
   0x2   :  { %12 = vsyncpa [#allocation6], 0  ;;  %s2811_s18 = smov [#allocation7]  }
   0x3   :  { %s30_s19 = sshll.u32 %s2811_s18, 4  ;;  %s31_s19 = int_to_ptr.vmem [resolvable:$true] %s30_s19 }
   0x4   :  { %s2733_s20 = scalar_lea.vmem %s31_s19, 29568  ;;  %p2738_p1 = scmp.lt.s32.totalorder %s31_s19, %s31_s19 }
   0x5   :  { %p2734_p0 = scmp.ne.s32.totalorder %s31_s19, %s2733_s20  ;;  %p2739_p2 = scmp.lt.s32.totalorder %s2733_s20, %s2733_s20 }
   0x7   :  { %p2740_p3 = por %p2739_p2, %p2738_p1 }
   0x9   :  { %p2741_p4 = pnand %p2740_p3, %p2734_p0 }
   0xb   :  { %2744 = shalt.err (!%p2741_p4)
}
   0xc   :  { %s2812_s21 = smov 384   ;;  %s2813_s22 = smov 24  }
   0xd   :  { %36 = dma.hbm_to_vmem [thread:$0]  %s3424_s1, 29568, %s31_s19, [#allocation8], %s2812_s21, %s2812_s21, %s2813_s22  }
   0xe   :  { %s2814_s25 = smov [#allocation4]  }
   0xf   :  { %s18_s26 = sshll.u32 %s2814_s25, 4  ;;  %s19_s26 = int_to_ptr.vmem [resolvable:$true] %s18_s26 }
  0x10   :  { %s2753_s27 = scalar_lea.vmem %s19_s26, 512  ;;  %p2758_p6 = scmp.lt.s32.totalorder %s19_s26, %s19_s26 }
  0x11   :  { %p2754_p5 = scmp.ne.s32.totalorder %s19_s26, %s2753_s27  ;;  %p2759_p7 = scmp.lt.s32.totalorder %s2753_s27, %s2753_s27 }
  0x13   :  { %p2760_p8 = por %p2759_p7, %p2758_p6 }
  0x15   :  { %p2761_p9 = pnand %p2760_p8, %p2754_p5 }
  0x17   :  { %2764 = shalt.err (!%p2761_p9)
}
  0x18   :  { %s2815_s28 = smov 128   ;;  %s2816_s29 = smov 8  }
  0x19   :  { %24 = dma.hbm_to_vmem [thread:$0]  %s3423_s0, 512, %s19_s26, [#allocation5], %s2815_s28, %s2815_s28, %s2816_s29  }
  0x1a   :  { %s2817_s1 = smov [#allocation9]  }
  0x1b   :  { %s42_s7 = sshll.u32 %s2817_s1, 4  ;;  %s43_s7 = int_to_ptr.vmem [resolvable:$true] %s42_s7 }
  0x1c   :  { %s2773_s8 = scalar_lea.vmem %s43_s7, 6912  ;;  %p2778_p11 = scmp.lt.s32.totalorder %s43_s7, %s43_s7 }
  0x1d   :  { %p2774_p10 = scmp.ne.s32.totalorder %s43_s7, %s2773_s8  ;;  %p2779_p12 = scmp.lt.s32.totalorder %s2773_s8, %s2773_s8 }
  0x1f   :  { %p2780_p13 = por %p2779_p12, %p2778_p11 }
  0x21   :  { %p2781_p0 = pnand %p2780_p13, %p2774_p10 }
  0x23   :  { %2784 = shalt.err (!%p2781_p0)
}
  0x24   :  { %48 = dma.hbm_to_vmem [thread:$0]  %s3425_s2, 6912, %s43_s7, [#allocation8], %s2815_s28, %s2815_s28, %s2816_s29  }
  0x25   :  { %2805 = dma.done.wait [#allocation5], 512  }
  0x26   :  { %2806 = vsyncadd [#allocation5], 4294966784 }
  0x27   :  { %2807 = dma.done.wait [#allocation8], 36480  }
  0x28   :  { %2808 = vsyncadd [#allocation8], 4294930816  ;;  %vm67_vm0 = vcmask 97280   ;;  %vm72_vm1 = vcmask 720480   ;;  %v3429_v0 = vmov 0.0   ;;  %vm62_vm2 = vcmask 714752  }
  0x29   :  { %68 = vst.msk [vmem:[#allocation2 + $0x3] sm:$0xff] %vm67_vm0, %v3429_v0  ;;  %69 = vst.msk [vmem:[#allocation2 + $0xb] sm:$0xff] %vm67_vm0, %v3429_v0  ;;  %254 = vmatprep.mubr.f32.mxu1 %v3429_v0  ;;  %440 = vmatprep.mubr.f32.mxu0 %v3429_v0  ;;  %v77_v1 = vld [vmem:[#allocation4] sm:$0xff]  ;;  %v78_v2 = vld [vmem:[#allocation4 + $0x8] sm:$0xff]  ;;  %s2819_s0 = smov 12   ;;  %vm97_vm3 = vcmask 621664  }
  0x2a   :  { %70 = vst.msk [vmem:[#allocation2 + $0x1b] sm:$0xff] %vm67_vm0, %v3429_v0  ;;  %71 = vst.msk [vmem:[#allocation2 + $0x23] sm:$0xff] %vm67_vm0, %v3429_v0  ;;  %v79_v3 = vld [vmem:[#allocation4 + $0x10] sm:$0xff]  ;;  %85 = vrot.lane.b32.xlu0 %v77_v1, %s2819_s0  ;;  %v80_v4 = vld [vmem:[#allocation4 + $0x18] sm:$0xff]  ;;  %vm177_vm4 = vcmask 719872   ;;  %vm1806_vm6 = vcmask 64513  }
  0x2b   :  { %73 = vst.msk [vmem:[#allocation2 + $0x3] sm:$0xff] %vm72_vm1, %v3429_v0  ;;  %74 = vst.msk [vmem:[#allocation2 + $0xb] sm:$0xff] %vm72_vm1, %v3429_v0  ;;  %89 = vrot.lane.b32.xlu1 %v79_v3, %s2819_s0  ;;  %v175_v5 = vld [vmem:[#allocation7 + $0x200] sm:$0xff]  ;;  %v137_v6 = vld [vmem:[#allocation7 + $0xf8] sm:$0xff]  ;;  %vm1815_vm7 = vcmask 130113   ;;  %vm1808_vm8 = vcmask 64512  }
  0x2c   :  { %75 = vst.msk [vmem:[#allocation2 + $0x1b] sm:$0xff] %vm72_vm1, %v3429_v0  ;;  %76 = vst.msk [vmem:[#allocation2 + $0x23] sm:$0xff] %vm72_vm1, %v3429_v0  ;;  %200 = vmatprep.subr.mxu1 %v175_v5  ;;  %386 = vmatprep.subr.mxu0 %v137_v6  ;;  %v174_v7 = vld [vmem:[#allocation7 + $0x1f8] sm:$0xff]  ;;  %v136_v8 = vld [vmem:[#allocation7 + $0xf0] sm:$0xff]  ;;  %vm1817_vm9 = vcmask 130112   ;;  %vm1810_vm10 = vcmask 57344  }
  0x2d   :  { %63 = vst.msk [vmem:[#allocation2] sm:$0x7] %vm62_vm2, %v3429_v0  ;;  %64 = vst.msk [vmem:[#allocation2 + $0x18] sm:$0x7] %vm62_vm2, %v3429_v0  ;;  %v172_v9 = vld [vmem:[#allocation7 + $0x1e8] sm:$0xff]  ;;  %201 = vmatpush1.msra.mxu1 %v174_v7  ;;  %387 = vmatpush1.msra.mxu0 %v136_v8  ;;  %v134_v10 = vld [vmem:[#allocation7 + $0xe0] sm:$0xff] }
  0x2e   :  { %65 = vst.msk [vmem:[#allocation2 + $0x13] sm:$0x7] %vm62_vm2, %v3429_v0  ;;  %66 = vst.msk [vmem:[#allocation2 + $0x2b] sm:$0x7] %vm62_vm2, %v3429_v0  ;;  %v171_v11 = vld [vmem:[#allocation7 + $0x1e0] sm:$0xff]  ;;  %v133_v12 = vld [vmem:[#allocation7 + $0xd8] sm:$0xff]  ;;  %202 = vmatprep.subr.mxu1 %v172_v9  ;;  %388 = vmatprep.subr.mxu0 %v134_v10 }
  0x2f   :  { %v169_v13 = vld [vmem:[#allocation7 + $0x1d0] sm:$0xff]  ;;  %v131_v14 = vld [vmem:[#allocation7 + $0xc8] sm:$0xff]  ;;  %87 = vrot.lane.b32.xlu0 %v78_v2, %s2819_s0  ;;  %91 = vrot.lane.b32.xlu1 %v80_v4, %s2819_s0  ;;  %v130_v16 = vld [vmem:[#allocation7 + $0xc0] sm:$0xff]  ;;  %1807 = vst.msk [vmem:[#allocation3] sm:$0xfe] %vm1806_vm6, %v3429_v0  ;;  %vm1819_vm11 = vcmask 122944  }
  0x30   :  { %v168_v15 = vld [vmem:[#allocation7 + $0x1c8] sm:$0xff]  ;;  %203 = vmatpush1.msra.mxu1 %v171_v11  ;;  %389 = vmatpush1.msra.mxu0 %v133_v12  ;;  %v166_v17 = vld [vmem:[#allocation7 + $0x1b8] sm:$0xff]  ;;  %v128_v18 = vld [vmem:[#allocation7 + $0xb0] sm:$0xff]  ;;  %1816 = vst.msk [vmem:[#allocation3 + $0x8] sm:$0xfe] %vm1815_vm7, %v3429_v0  ;;  %vm1828_vm12 = vcmask 1040384  }
  0x31   :  { %204 = vmatprep.subr.mxu1 %v169_v13  ;;  %390 = vmatprep.subr.mxu0 %v131_v14  ;;  %v165_v19 = vld [vmem:[#allocation7 + $0x1b0] sm:$0xff]  ;;  %v127_v20 = vld [vmem:[#allocation7 + $0xa8] sm:$0xff]  ;;  %v163_v21 = vld [vmem:[#allocation7 + $0x1a0] sm:$0xff]  ;;  %1812 = vst.msk [vmem:[#allocation3 + $0x30] sm:$0xfe] %vm1806_vm6, %v3429_v0  ;;  %vm1853_vm13 = vcmask 1047617  }
  0x32   :  { %205 = vmatpush1.msra.mxu1 %v168_v15  ;;  %391 = vmatpush1.msra.mxu0 %v130_v16  ;;  %v125_v22 = vld [vmem:[#allocation7 + $0x98] sm:$0xff]  ;;  %v124_v24 = vld [vmem:[#allocation7 + $0x90] sm:$0xff]  ;;  %v160_v25 = vld [vmem:[#allocation7 + $0x188] sm:$0xff]  ;;  %1821 = vst.msk [vmem:[#allocation3 + $0x38] sm:$0xfe] %vm1815_vm7, %v3429_v0  ;;  %vm1856_vm14 = vcmask 1047616  }
  0x33   :  { %206 = vmatprep.subr.mxu1 %v166_v17  ;;  %392 = vmatprep.subr.mxu0 %v128_v18  ;;  %v162_v23 = vld [vmem:[#allocation7 + $0x198] sm:$0xff]  ;;  %v122_v26 = vld [vmem:[#allocation7 + $0x80] sm:$0xff]  ;;  %v157_v29 = vld [vmem:[#allocation7 + $0x170] sm:$0xff]  ;;  %vm1859_vm15 = vcmask 1040448   ;;  %vm1958_vm0 = vcmask 130048   ;;  %vm1914_vm1 = vcmask 1046528  }
  0x34   :  { %207 = vmatpush1.msra.mxu1 %v165_v19  ;;  %393 = vmatpush1.msra.mxu0 %v127_v20  ;;  %v159_v27 = vld [vmem:[#allocation7 + $0x180] sm:$0xff]  ;;  %v121_v28 = vld [vmem:[#allocation7 + $0x78] sm:$0xff]  ;;  %v119_v30 = vld [vmem:[#allocation7 + $0x68] sm:$0xff]  ;;  %vm2163_vm2 = vcmask 1045504  }
  0x35   :  { %208 = vmatprep.subr.mxu1 %v163_v21  ;;  %394 = vmatprep.subr.mxu0 %v125_v22  ;;  %v156_v31 = vld [vmem:[#allocation7 + $0x168] sm:$0xff]  ;;  %v118_v32 = vld [vmem:[#allocation7 + $0x60] sm:$0xff]  ;;  %v154_v33 = vld [vmem:[#allocation7 + $0x158] sm:$0xff] }
  0x36   :  { %209 = vmatpush1.msra.mxu1 %v162_v23  ;;  %395 = vmatpush1.msra.mxu0 %v124_v24  ;;  %v116_v34 = vld [vmem:[#allocation7 + $0x50] sm:$0xff]  ;;  %v115_v36 = vld [vmem:[#allocation7 + $0x48] sm:$0xff]  ;;  %v151_v37 = vld [vmem:[#allocation7 + $0x140] sm:$0xff] }
  0x37   :  { %210 = vmatprep.subr.mxu1 %v160_v25  ;;  %396 = vmatprep.subr.mxu0 %v122_v26  ;;  %v153_v35 = vld [vmem:[#allocation7 + $0x150] sm:$0xff]  ;;  %v113_v38 = vld [vmem:[#allocation7 + $0x38] sm:$0xff]  ;;  %v148_v41 = vld [vmem:[#allocation7 + $0x128] sm:$0xff] }
  0x38   :  { %211 = vmatpush1.msra.mxu1 %v159_v27  ;;  %397 = vmatpush1.msra.mxu0 %v121_v28  ;;  %v150_v39 = vld [vmem:[#allocation7 + $0x138] sm:$0xff]  ;;  %v112_v40 = vld [vmem:[#allocation7 + $0x30] sm:$0xff]  ;;  %v110_v42 = vld [vmem:[#allocation7 + $0x20] sm:$0xff] }
  0x39   :  { %212 = vmatprep.subr.mxu1 %v157_v29  ;;  %398 = vmatprep.subr.mxu0 %v119_v30  ;;  %v147_v43 = vld [vmem:[#allocation7 + $0x120] sm:$0xff]  ;;  %v109_v44 = vld [vmem:[#allocation7 + $0x18] sm:$0xff]  ;;  %v145_v45 = vld [vmem:[#allocation7 + $0x110] sm:$0xff] }
  0x3a   :  { %213 = vmatpush1.msra.mxu1 %v156_v31  ;;  %399 = vmatpush1.msra.mxu0 %v118_v32  ;;  %v107_v46 = vld [vmem:[#allocation7 + $0x8] sm:$0xff]  ;;  %v106_v48 = vld [vmem:[#allocation7] sm:$0xff]  ;;  %v173_v56 = vld [vmem:[#allocation7 + $0x1f0] sm:$0xff] }
  0x3b   :  { %214 = vmatprep.subr.mxu1 %v154_v33  ;;  %400 = vmatprep.subr.mxu0 %v116_v34  ;;  %v144_v47 = vld [vmem:[#allocation7 + $0x108] sm:$0xff]  ;;  %v585_v55 = vld [vmem:[#allocation7 + $0x300] sm:$0xff]  ;;  %v583_v59 = vld [vmem:[#allocation7 + $0x2f0] sm:$0xff] }
  0x3c   :  { %215 = vmatpush1.msra.mxu1 %v153_v35  ;;  %401 = vmatpush1.msra.mxu0 %v115_v36  ;;  %v176_v49 = vld [vmem:[#allocation7 + $0x208] sm:$0xff]  ;;  %v170_v61 = vld [vmem:[#allocation7 + $0x1d8] sm:$0xff]  ;;  %v579_v2 = vld [vmem:[#allocation7 + $0x2d0] sm:$0xff] }
  0x3d   :  { %216 = vmatprep.subr.mxu1 %v151_v37  ;;  %402 = vmatprep.subr.mxu0 %v113_v38  ;;  %v586_v50 = vld [vmem:[#allocation7 + $0x308] sm:$0xff]  ;;  %v580_v62 = vld [vmem:[#allocation7 + $0x2d8] sm:$0xff]  ;;  %v167_v3 = vld [vmem:[#allocation7 + $0x1c0] sm:$0xff] }
  0x3e   :  { %217 = vmatpush1.msra.mxu1 %v150_v39  ;;  %403 = vmatpush1.msra.mxu0 %v112_v40  ;;  %v582_v60 = vld [vmem:[#allocation7 + $0x2e8] sm:$0xff]  ;;  %v577_v4 = vld [vmem:[#allocation7 + $0x2c0] sm:$0xff]  ;;  %v576_v5 = vld [vmem:[#allocation7 + $0x2b8] sm:$0xff] }
  0x3f   :  { %218 = vmatprep.subr.mxu1 %v148_v41  ;;  %404 = vmatprep.subr.mxu0 %v110_v42  ;;  %v164_v6 = vld [vmem:[#allocation7 + $0x1a8] sm:$0xff]  ;;  %v573_v10 = vld [vmem:[#allocation7 + $0x2a0] sm:$0xff]  ;;  %v161_v11 = vld [vmem:[#allocation7 + $0x190] sm:$0xff] }
  0x40   :  { %219 = vmatpush1.msra.mxu1 %v147_v43  ;;  %405 = vmatpush1.msra.mxu0 %v109_v44  ;;  %v574_v7 = vld [vmem:[#allocation7 + $0x2a8] sm:$0xff]  ;;  %v571_v12 = vld [vmem:[#allocation7 + $0x290] sm:$0xff]  ;;  %v158_v14 = vld [vmem:[#allocation7 + $0x178] sm:$0xff] }
  0x41   :  { %220 = vmatprep.subr.mxu1 %v145_v45  ;;  %406 = vmatprep.subr.mxu0 %v107_v46  ;;  %v570_v13 = vld [vmem:[#allocation7 + $0x288] sm:$0xff]  ;;  %v568_v15 = vld [vmem:[#allocation7 + $0x278] sm:$0xff]  ;;  %v567_v18 = vld [vmem:[#allocation7 + $0x270] sm:$0xff] }
  0x42   :  { %221 = vmatpush1.msra.mxu1 %v144_v47  ;;  %407 = vmatpush1.msra.mxu0 %v106_v48  ;;  %v155_v19 = vld [vmem:[#allocation7 + $0x160] sm:$0xff]  ;;  %v564_v21 = vld [vmem:[#allocation7 + $0x258] sm:$0xff]  ;;  %v152_v22 = vld [vmem:[#allocation7 + $0x148] sm:$0xff] }
  0x43   :  { %2519 = vmatprep.subr.mxu1 %v176_v49  ;;  %610 = vmatprep.subr.mxu0 %v586_v50  ;;  %v565_v20 = vld [vmem:[#allocation7 + $0x260] sm:$0xff]  ;;  %v562_v23 = vld [vmem:[#allocation7 + $0x248] sm:$0xff]  ;;  %v149_v25 = vld [vmem:[#allocation7 + $0x130] sm:$0xff] }
  0x44   :  { %v561_v24 = vld [vmem:[#allocation7 + $0x240] sm:$0xff]  ;;  %v559_v26 = vld [vmem:[#allocation7 + $0x230] sm:$0xff]  ;;  %v558_v27 = vld [vmem:[#allocation7 + $0x228] sm:$0xff] }
  0x45   :  { %v146_v28 = vld [vmem:[#allocation7 + $0x118] sm:$0xff]  ;;  %v555_v30 = vld [vmem:[#allocation7 + $0x210] sm:$0xff]  ;;  %v138_v31 = vld [vmem:[#allocation7 + $0x100] sm:$0xff] }
  0x46   :  { %v556_v29 = vld [vmem:[#allocation7 + $0x218] sm:$0xff]  ;;  %v822_v32 = vld [vmem:[#allocation7 + $0x410] sm:$0xff]  ;;  %v821_v34 = vld [vmem:[#allocation7 + $0x408] sm:$0xff] }
  0x47   :  { %v135_v35 = vld [vmem:[#allocation7 + $0xe8] sm:$0xff]  ;;  %v819_v36 = vld [vmem:[#allocation7 + $0x3f8] sm:$0xff]  ;;  %v818_v37 = vld [vmem:[#allocation7 + $0x3f0] sm:$0xff] }
  0x48   :  { %v132_v38 = vld [vmem:[#allocation7 + $0xd0] sm:$0xff]  ;;  %v816_v39 = vld [vmem:[#allocation7 + $0x3e0] sm:$0xff]  ;;  %v815_v41 = vld [vmem:[#allocation7 + $0x3d8] sm:$0xff] }
  0x49   :  { %v129_v42 = vld [vmem:[#allocation7 + $0xb8] sm:$0xff]  ;;  %v813_v43 = vld [vmem:[#allocation7 + $0x3c8] sm:$0xff]  ;;  %v812_v44 = vld [vmem:[#allocation7 + $0x3c0] sm:$0xff] }
  0x4a   :  { %v126_v45 = vld [vmem:[#allocation7 + $0xa0] sm:$0xff]  ;;  %v810_v46 = vld [vmem:[#allocation7 + $0x3b0] sm:$0xff]  ;;  %v809_v48 = vld [vmem:[#allocation7 + $0x3a8] sm:$0xff] }
  0x4b   :  { %v807_v50 = vld [vmem:[#allocation7 + $0x398] sm:$0xff] }
  0x9c   :  { %v86_v51 = vpop.permute.xlu0 %85 }
  0x9d   :  { %v90_v52 = vpop.permute.xlu1 %89  ;;  %98 = vst.msk [vmem:[#allocation2 + $0x3] sm:$0xff] %vm97_vm3, %v86_v51  ;;  %v806_v51 = vld [vmem:[#allocation7 + $0x390] sm:$0xff] }
  0x9e   :  { %100 = vst.msk [vmem:[#allocation2 + $0x1b] sm:$0xff] %vm97_vm3, %v90_v52  ;;  %v120_v52 = vld [vmem:[#allocation7 + $0x70] sm:$0xff] }
  0xa1   :  { %v88_v53 = vpop.permute.xlu0 %87  ;;  %v92_v54 = vpop.permute.xlu1 %91 }
  0xa2   :  { %99 = vst.msk [vmem:[#allocation2 + $0xb] sm:$0xff] %vm97_vm3, %v88_v53  ;;  %101 = vst.msk [vmem:[#allocation2 + $0x23] sm:$0xff] %vm97_vm3, %v92_v54  ;;  %v804_v53 = vld [vmem:[#allocation7 + $0x380] sm:$0xff] }
  0xa4   :  { %v2880_v57 = vld [vmem:[#allocation2 + $0x1] sm:$0xff] }
  0xa5   :  { %v2882_v58 = vld [vmem:[#allocation2] sm:$0xff]  ;;  %2345 = vmatmul.mubr.msk.f32.vlgmr.msra.gmra.mxu1 %vm177_vm4, %v2880_v57  ;;  %v2900_v9 = vld [vmem:[#allocation2 + $0x18] sm:$0xff] }
  0xa6   :  { %2353 = vmatmul.mubr.msk.f32.vlgmr.msra.gmra.mxu0 %vm177_vm4, %v2882_v58  ;;  %2520 = vmatpush3.msra.mxu1 %v176_v49  ;;  %v2898_v8 = vld [vmem:[#allocation2 + $0x19] sm:$0xff]  ;;  %v2920_v33 = vld [vmem:[#allocation2 + $0x2] sm:$0xff] }
  0xa7   :  { %611 = vmatpush1.msra.mxu0 %v585_v55  ;;  %2521 = vmatprep.subr.mxu1 %v173_v56  ;;  %v2935_v47 = vld [vmem:[#allocation2 + $0x1a] sm:$0xff]  ;;  %v803_v55 = vld [vmem:[#allocation7 + $0x378] sm:$0xff] }
  0xa8   :  { %612 = vmatprep.subr.mxu0 %v583_v59  ;;  %2522 = vmatpush3.msra.mxu1 %v173_v56  ;;  %v123_v49 = vld [vmem:[#allocation7 + $0x88] sm:$0xff]  ;;  %v117_v56 = vld [vmem:[#allocation7 + $0x58] sm:$0xff]  ;;  %v114_v59 = vld [vmem:[#allocation7 + $0x40] sm:$0xff] }
  0xa9   :  { %613 = vmatpush1.msra.mxu0 %v582_v60  ;;  %v2888_v63 = vld [vmem:[#allocation2 + $0x9] sm:$0xff]  ;;  %260 = vmatprep.mubr.f32.mxu1 %v3429_v0  ;;  %v142_v16 = vld [vmem:[#allocation2 + $0x21] sm:$0xff] }
  0xaa   :  { %v2890_v1 = vld [vmem:[#allocation2 + $0x8] sm:$0xff]  ;;  %2523 = vmatprep.subr.mxu1 %v170_v61  ;;  %446 = vmatprep.mubr.f32.mxu0 %v3429_v0  ;;  %v2908_v17 = vld [vmem:[#allocation2 + $0x20] sm:$0xff] }
  0xab   :  { %614 = vmatprep.subr.mxu0 %v580_v62  ;;  %2346 = vmatmul.mubr.msk.f32.gmra.mxu1 %vm177_vm4, %v2888_v63  ;;  %v2928_v40 = vld [vmem:[#allocation2 + $0xa] sm:$0xff]  ;;  %v2940_v54 = vld [vmem:[#allocation2 + $0x22] sm:$0xff]  ;;  %v111_v62 = vld [vmem:[#allocation7 + $0x28] sm:$0xff] }
  0xac   :  { %2354 = vmatmul.mubr.msk.f32.gmra.mxu0 %vm177_vm4, %v2890_v1  ;;  %2524 = vmatpush3.msra.mxu1 %v170_v61  ;;  %v798_v60 = vld [vmem:[#allocation7 + $0x350] sm:$0xff]  ;;  %v797_v61 = vld [vmem:[#allocation7 + $0x348] sm:$0xff] }
  0xad   :  { %615 = vmatpush1.msra.mxu0 %v579_v2  ;;  %2525 = vmatprep.subr.mxu1 %v167_v3  ;;  %v794_v2 = vld [vmem:[#allocation7 + $0x330] sm:$0xff] }
  0xae   :  { %616 = vmatprep.subr.mxu0 %v577_v4  ;;  %2526 = vmatpush3.msra.mxu1 %v167_v3  ;;  %v108_v3 = vld [vmem:[#allocation7 + $0x10] sm:$0xff]  ;;  %v792_v4 = vld [vmem:[#allocation7 + $0x320] sm:$0xff] }
  0xaf   :  { %617 = vmatpush1.msra.mxu0 %v576_v5  ;;  %266 = vmatprep.mubr.f32.mxu1 %v3429_v0  ;;  %v791_v5 = vld [vmem:[#allocation7 + $0x318] sm:$0xff] }
  0xb0   :  { %2527 = vmatprep.subr.mxu1 %v164_v6  ;;  %452 = vmatprep.mubr.f32.mxu0 %v3429_v0 }
  0xb1   :  { %618 = vmatprep.subr.mxu0 %v574_v7  ;;  %2347 = vmatmul.mubr.msk.f32.gmra.mxu1 %vm177_vm4, %v2898_v8  ;;  %v1058_v7 = vld [vmem:[#allocation7 + $0x518] sm:$0xff] }
  0xb2   :  { %2355 = vmatmul.mubr.msk.f32.gmra.mxu0 %vm177_vm4, %v2900_v9  ;;  %2528 = vmatpush3.msra.mxu1 %v164_v6  ;;  %v587_v6 = vld [vmem:[#allocation7 + $0x310] sm:$0xff] }
  0xb3   :  { %619 = vmatpush1.msra.mxu0 %v573_v10  ;;  %2529 = vmatprep.subr.mxu1 %v161_v11  ;;  %v1057_v10 = vld [vmem:[#allocation7 + $0x510] sm:$0xff] }
  0xb4   :  { %620 = vmatprep.subr.mxu0 %v571_v12  ;;  %2530 = vmatpush3.msra.mxu1 %v161_v11  ;;  %v584_v11 = vld [vmem:[#allocation7 + $0x2f8] sm:$0xff]  ;;  %v1055_v12 = vld [vmem:[#allocation7 + $0x500] sm:$0xff] }
  0xb5   :  { %621 = vmatpush1.msra.mxu0 %v570_v13  ;;  %272 = vmatprep.mubr.f32.mxu1 %v3429_v0  ;;  %v1054_v13 = vld [vmem:[#allocation7 + $0x4f8] sm:$0xff] }
  0xb6   :  { %2531 = vmatprep.subr.mxu1 %v158_v14  ;;  %458 = vmatprep.mubr.f32.mxu0 %v3429_v0 }
  0xb7   :  { %622 = vmatprep.subr.mxu0 %v568_v15  ;;  %2348 = vmatmul.mubr.msk.f32.gmra.mxu1 %vm177_vm4, %v142_v16  ;;  %v2956_v15 = vld [vmem:[#allocation2 + $0xb] sm:$0xff] }
  0xb8   :  { %2356 = vmatmul.mubr.msk.f32.gmra.mxu0 %vm177_vm4, %v2908_v17  ;;  %2532 = vmatpush3.msra.mxu1 %v158_v14  ;;  %v581_v14 = vld [vmem:[#allocation7 + $0x2e0] sm:$0xff] }
  0xb9   :  { %623 = vmatpush1.msra.mxu0 %v567_v18  ;;  %2533 = vmatprep.subr.mxu1 %v155_v19  ;;  %v578_v18 = vld [vmem:[#allocation7 + $0x2c8] sm:$0xff] }
  0xba   :  { %2541 = vmatprep.mubr.msk.f32.mxu1 %vm177_vm4, %v2880_v57  ;;  %624 = vmatprep.subr.mxu0 %v565_v20  ;;  %v801_v57 = vld [vmem:[#allocation7 + $0x368] sm:$0xff]  ;;  %v575_v20 = vld [vmem:[#allocation7 + $0x2b0] sm:$0xff] }
  0xbb   :  { %2534 = vmatpush3.msra.mxu1 %v155_v19  ;;  %625 = vmatpush1.msra.mxu0 %v564_v21  ;;  %v1048_v19 = vld [vmem:[#allocation7 + $0x4c8] sm:$0xff] }
  0xbc   :  { %2535 = vmatprep.subr.mxu1 %v152_v22  ;;  %626 = vmatprep.subr.mxu0 %v562_v23  ;;  %v2963_v21 = vld [vmem:[#allocation2 + $0x1b] sm:$0xff]  ;;  %v572_v23 = vld [vmem:[#allocation7 + $0x298] sm:$0xff] }
  0xbd   :  { %2536 = vmatpush3.msra.mxu1 %v152_v22  ;;  %627 = vmatpush1.msra.mxu0 %v561_v24  ;;  %v1045_v22 = vld [vmem:[#allocation7 + $0x4b0] sm:$0xff]  ;;  %v1043_v24 = vld [vmem:[#allocation7 + $0x4a0] sm:$0xff] }
  0xbe   :  { %2537 = vmatprep.subr.mxu1 %v149_v25  ;;  %628 = vmatprep.subr.mxu0 %v559_v26  ;;  %v569_v26 = vld [vmem:[#allocation7 + $0x280] sm:$0xff] }
  0xbf   :  { %2538 = vmatpush3.msra.mxu1 %v149_v25  ;;  %629 = vmatpush1.msra.mxu0 %v558_v27  ;;  %v1042_v25 = vld [vmem:[#allocation7 + $0x498] sm:$0xff]  ;;  %v1040_v27 = vld [vmem:[#allocation7 + $0x488] sm:$0xff] }
  0xc0   :  { %2539 = vmatprep.subr.mxu1 %v146_v28  ;;  %630 = vmatprep.subr.mxu0 %v556_v29  ;;  %v1039_v29 = vld [vmem:[#allocation7 + $0x480] sm:$0xff] }
  0xc1   :  { %2540 = vmatpush3.msra.mxu1 %v146_v28  ;;  %631 = vmatpush1.msra.mxu0 %v555_v30  ;;  %v2968_v28 = vld [vmem:[#allocation2 + $0x23] sm:$0xff]  ;;  %v566_v30 = vld [vmem:[#allocation7 + $0x268] sm:$0xff] }
  0xc2   :  { %664 = vmatprep.mubr.f32.mxu0 %v3429_v0  ;;  %2542 = vmatmul.mubr.msk.f32.vlgmr.msra.gmra.mxu1 %vm177_vm4, %v2888_v63  ;;  %v795_v63 = vld [vmem:[#allocation7 + $0x338] sm:$0xff] }
  0xc3   :  { %2547 = vmatprep.subr.mxu1 %v138_v31  ;;  %2361 = vmatmul.mubr.msk.f32.vlgmr.msra.gmra.mxu0 %vm177_vm4, %v2920_v33 }
  0xc4   :  { %846 = vmatprep.subr.mxu0 %v822_v32  ;;  %2544 = vmatprep.mubr.msk.f32.mxu1 %vm177_vm4, %v2898_v8  ;;  %v2947_v8 = vld [vmem:[#allocation2 + $0x3] sm:$0xff]  ;;  %v1036_v32 = vld [vmem:[#allocation7 + $0x468] sm:$0xff] }
  0xc5   :  { %2548 = vmatpush3.msra.mxu1 %v138_v31  ;;  %847 = vmatpush1.msra.mxu0 %v821_v34  ;;  %v1037_v31 = vld [vmem:[#allocation7 + $0x470] sm:$0xff]  ;;  %v1034_v34 = vld [vmem:[#allocation7 + $0x458] sm:$0xff] }
  0xc6   :  { %2549 = vmatprep.subr.mxu1 %v135_v35  ;;  %848 = vmatprep.subr.mxu0 %v819_v36  ;;  %v560_v36 = vld [vmem:[#allocation7 + $0x238] sm:$0xff] }
  0xc7   :  { %2550 = vmatpush3.msra.mxu1 %v135_v35  ;;  %670 = vmatprep.mubr.f32.mxu0 %v3429_v0  ;;  %v1033_v35 = vld [vmem:[#allocation7 + $0x450] sm:$0xff] }
  0xc8   :  { %849 = vmatpush1.msra.mxu0 %v818_v37  ;;  %2545 = vmatmul.mubr.msk.f32.gmra.mxu1 %vm177_vm4, %v142_v16  ;;  %v1051_v16 = vld [vmem:[#allocation7 + $0x4e0] sm:$0xff] }
  0xc9   :  { %2551 = vmatprep.subr.mxu1 %v132_v38  ;;  %2362 = vmatmul.mubr.msk.f32.gmra.mxu0 %vm177_vm4, %v2928_v40  ;;  %v1031_v37 = vld [vmem:[#allocation7 + $0x440] sm:$0xff] }
  0xca   :  { %850 = vmatprep.subr.mxu0 %v816_v39  ;;  %2552 = vmatpush3.msra.mxu1 %v132_v38  ;;  %v1030_v38 = vld [vmem:[#allocation7 + $0x438] sm:$0xff]  ;;  %v557_v39 = vld [vmem:[#allocation7 + $0x220] sm:$0xff] }
  0xcb   :  { %2569 = vmatprep.mubr.msk.f32.mxu1 %vm177_vm4, %v2882_v58  ;;  %851 = vmatpush1.msra.mxu0 %v815_v41  ;;  %v800_v58 = vld [vmem:[#allocation7 + $0x360] sm:$0xff]  ;;  %v1028_v41 = vld [vmem:[#allocation7 + $0x428] sm:$0xff] }
  0xcc   :  { %2553 = vmatprep.subr.mxu1 %v129_v42  ;;  %852 = vmatprep.subr.mxu0 %v813_v43  ;;  %v823_v43 = vld [vmem:[#allocation7 + $0x418] sm:$0xff] }
  0xcd   :  { %2554 = vmatpush3.msra.mxu1 %v129_v42  ;;  %676 = vmatprep.mubr.f32.mxu0 %v3429_v0  ;;  %v1027_v42 = vld [vmem:[#allocation7 + $0x420] sm:$0xff] }
  0xce   :  { %853 = vmatpush1.msra.mxu0 %v812_v44  ;;  %2555 = vmatprep.subr.mxu1 %v126_v45  ;;  %v1294_v44 = vld [vmem:[#allocation7 + $0x620] sm:$0xff] }
  0xcf   :  { %2363 = vmatmul.mubr.msk.f32.gmra.mxu0 %vm177_vm4, %v2935_v47  ;;  %854 = vmatprep.subr.mxu0 %v810_v46  ;;  %v1293_v46 = vld [vmem:[#allocation7 + $0x618] sm:$0xff] }
  0xd0   :  { %2556 = vmatpush3.msra.mxu1 %v126_v45  ;;  %855 = vmatpush1.msra.mxu0 %v809_v48  ;;  %v2975_v45 = vld [vmem:[#allocation2 + $0x4] sm:$0xff]  ;;  %v820_v48 = vld [vmem:[#allocation7 + $0x400] sm:$0xff] }
  0xd1   :  { %2557 = vmatprep.subr.mxu1 %v123_v49  ;;  %856 = vmatprep.subr.mxu0 %v807_v50  ;;  %v1290_v50 = vld [vmem:[#allocation7 + $0x600] sm:$0xff] }
  0xd2   :  { %2558 = vmatpush3.msra.mxu1 %v123_v49  ;;  %682 = vmatprep.mubr.f32.mxu0 %v3429_v0  ;;  %v1291_v49 = vld [vmem:[#allocation7 + $0x608] sm:$0xff] }
  0xd3   :  { %857 = vmatpush1.msra.mxu0 %v806_v51  ;;  %2559 = vmatprep.subr.mxu1 %v120_v52  ;;  %v817_v51 = vld [vmem:[#allocation7 + $0x3e8] sm:$0xff] }
  0xd4   :  { %2364 = vmatmul.mubr.msk.f32.gmra.mxu0 %vm177_vm4, %v2940_v54  ;;  %858 = vmatprep.subr.mxu0 %v804_v53  ;;  %v1287_v53 = vld [vmem:[#allocation7 + $0x5e8] sm:$0xff] }
  0xd5   :  { %2560 = vmatpush3.msra.mxu1 %v120_v52  ;;  %859 = vmatpush1.msra.mxu0 %v803_v55  ;;  %v2984_v52 = vld [vmem:[#allocation2 + $0xc] sm:$0xff]  ;;  %v814_v55 = vld [vmem:[#allocation7 + $0x3d0] sm:$0xff] }
  0xd6   :  { %2561 = vmatprep.subr.mxu1 %v117_v56  ;;  %860 = vmatprep.subr.mxu0 %v801_v57  ;;  %v811_v57 = vld [vmem:[#allocation7 + $0x3b8] sm:$0xff] }
  0xd7   :  { %2562 = vmatpush3.msra.mxu1 %v117_v56  ;;  %861 = vmatpush1.msra.mxu0 %v800_v58  ;;  %v1284_v56 = vld [vmem:[#allocation7 + $0x5d0] sm:$0xff] }
  0xd8   :  { %2563 = vmatprep.subr.mxu1 %v114_v59  ;;  %862 = vmatprep.subr.mxu0 %v798_v60  ;;  %v2991_v58 = vld [vmem:[#allocation2 + $0x1c] sm:$0xff]  ;;  %v808_v60 = vld [vmem:[#allocation7 + $0x3a0] sm:$0xff] }
  0xd9   :  { %2564 = vmatpush3.msra.mxu1 %v114_v59  ;;  %863 = vmatpush1.msra.mxu0 %v797_v61  ;;  %v1281_v59 = vld [vmem:[#allocation7 + $0x5b8] sm:$0xff]  ;;  %v1279_v61 = vld [vmem:[#allocation7 + $0x5a8] sm:$0xff] }
  0xda   :  { %2565 = vmatprep.subr.mxu1 %v111_v62  ;;  %864 = vmatprep.subr.mxu0 %v795_v63  ;;  %v805_v63 = vld [vmem:[#allocation7 + $0x388] sm:$0xff] }
  0xdb   :  { %2566 = vmatpush3.msra.mxu1 %v111_v62  ;;  %865 = vmatpush1.msra.mxu0 %v794_v2  ;;  %v1278_v62 = vld [vmem:[#allocation7 + $0x5a0] sm:$0xff]  ;;  %v1276_v2 = vld [vmem:[#allocation7 + $0x590] sm:$0xff] }
  0xdc   :  { %2567 = vmatprep.subr.mxu1 %v108_v3  ;;  %866 = vmatprep.subr.mxu0 %v792_v4  ;;  %v1275_v4 = vld [vmem:[#allocation7 + $0x588] sm:$0xff] }
  0xdd   :  { %2568 = vmatpush3.msra.mxu1 %v108_v3  ;;  %867 = vmatpush1.msra.mxu0 %v791_v5  ;;  %v2996_v3 = vld [vmem:[#allocation2 + $0x24] sm:$0xff] }
  0xde   :  { %900 = vmatprep.mubr.f32.mxu0 %v3429_v0  ;;  %2570 = vmatmul.mubr.msk.f32.vlgmr.msra.gmra.mxu1 %vm177_vm4, %v2890_v1  ;;  %v1052_v1 = vld [vmem:[#allocation7 + $0x4e8] sm:$0xff]  ;;  %v802_v5 = vld [vmem:[#allocation7 + $0x370] sm:$0xff] }
  0xdf   :  { %2575 = vmatprep.subr.mxu1 %v587_v6  ;;  %2369 = vmatmul.mubr.msk.f32.vlgmr.msra.gmra.mxu0 %vm177_vm4, %v2947_v8 }
  0xe0   :  { %1082 = vmatprep.subr.mxu0 %v1058_v7  ;;  %2572 = vmatprep.mubr.msk.f32.mxu1 %vm177_vm4, %v2900_v9  ;;  %v1049_v9 = vld [vmem:[#allocation7 + $0x4d0] sm:$0xff] }
  0xe1   :  { %2576 = vmatpush3.msra.mxu1 %v587_v6  ;;  %1083 = vmatpush1.msra.mxu0 %v1057_v10  ;;  %v1273_v6 = vld [vmem:[#allocation7 + $0x578] sm:$0xff]  ;;  %v1272_v7 = vld [vmem:[#allocation7 + $0x570] sm:$0xff]  ;;  %v1270_v10 = vld [vmem:[#allocation7 + $0x560] sm:$0xff] }
  0xe2   :  { %2577 = vmatprep.subr.mxu1 %v584_v11  ;;  %1084 = vmatprep.subr.mxu0 %v1055_v12  ;;  %v796_v12 = vld [vmem:[#allocation7 + $0x340] sm:$0xff] }
  0xe3   :  { %2578 = vmatpush3.msra.mxu1 %v584_v11  ;;  %906 = vmatprep.mubr.f32.mxu0 %v3429_v0  ;;  %v1269_v11 = vld [vmem:[#allocation7 + $0x558] sm:$0xff] }
  0xe4   :  { %1085 = vmatpush1.msra.mxu0 %v1054_v13  ;;  %2573 = vmatmul.mubr.msk.f32.gmra.mxu1 %vm177_vm4, %v2908_v17  ;;  %v1046_v17 = vld [vmem:[#allocation7 + $0x4b8] sm:$0xff]  ;;  %v1267_v13 = vld [vmem:[#allocation7 + $0x548] sm:$0xff] }
  0xe5   :  { %2579 = vmatprep.subr.mxu1 %v581_v14  ;;  %2370 = vmatmul.mubr.msk.f32.gmra.mxu0 %vm177_vm4, %v2956_v15 }
  0xe6   :  { %1086 = vmatprep.subr.mxu0 %v1052_v1  ;;  %2580 = vmatpush3.msra.mxu1 %v581_v14  ;;  %v1266_v14 = vld [vmem:[#allocation7 + $0x540] sm:$0xff]  ;;  %v793_v1 = vld [vmem:[#allocation7 + $0x328] sm:$0xff] }
  0xe7   :  { %2597 = vmatprep.mubr.msk.f32.mxu1 %vm177_vm4, %v2920_v33  ;;  %1087 = vmatpush1.msra.mxu0 %v1051_v16  ;;  %v563_v33 = vld [vmem:[#allocation7 + $0x250] sm:$0xff] }
  0xe8   :  { %2581 = vmatprep.subr.mxu1 %v578_v18  ;;  %1088 = vmatprep.subr.mxu0 %v1049_v9  ;;  %v1264_v16 = vld [vmem:[#allocation7 + $0x530] sm:$0xff]  ;;  %v1059_v9 = vld [vmem:[#allocation7 + $0x520] sm:$0xff] }
  0xe9   :  { %2582 = vmatpush3.msra.mxu1 %v578_v18  ;;  %912 = vmatprep.mubr.f32.mxu0 %v3429_v0  ;;  %v1263_v18 = vld [vmem:[#allocation7 + $0x528] sm:$0xff] }
  0xea   :  { %1089 = vmatpush1.msra.mxu0 %v1048_v19  ;;  %2583 = vmatprep.subr.mxu1 %v575_v20  ;;  %v1530_v19 = vld [vmem:[#allocation7 + $0x728] sm:$0xff] }
  0xeb   :  { %2371 = vmatmul.mubr.msk.f32.gmra.mxu0 %vm177_vm4, %v2963_v21  ;;  %1090 = vmatprep.subr.mxu0 %v1046_v17  ;;  %v1529_v17 = vld [vmem:[#allocation7 + $0x720] sm:$0xff] }
  0xec   :  { %2584 = vmatpush3.msra.mxu1 %v575_v20  ;;  %1091 = vmatpush1.msra.mxu0 %v1045_v22  ;;  %v3003_v20 = vld [vmem:[#allocation2 + $0x5] sm:$0xff]  ;;  %v1056_v22 = vld [vmem:[#allocation7 + $0x508] sm:$0xff] }
  0xed   :  { %2585 = vmatprep.subr.mxu1 %v572_v23  ;;  %1092 = vmatprep.subr.mxu0 %v1043_v24  ;;  %v1526_v24 = vld [vmem:[#allocation7 + $0x708] sm:$0xff] }
  0xee   :  { %2586 = vmatpush3.msra.mxu1 %v572_v23  ;;  %918 = vmatprep.mubr.f32.mxu0 %v3429_v0  ;;  %v1527_v23 = vld [vmem:[#allocation7 + $0x710] sm:$0xff] }
  0xef   :  { %1093 = vmatpush1.msra.mxu0 %v1042_v25  ;;  %2587 = vmatprep.subr.mxu1 %v569_v26  ;;  %v1053_v25 = vld [vmem:[#allocation7 + $0x4f0] sm:$0xff] }
  0xf0   :  { %2372 = vmatmul.mubr.msk.f32.gmra.mxu0 %vm177_vm4, %v2968_v28  ;;  %1094 = vmatprep.subr.mxu0 %v1040_v27  ;;  %v1523_v27 = vld [vmem:[#allocation7 + $0x6f0] sm:$0xff] }
  0xf1   :  { %2588 = vmatpush3.msra.mxu1 %v569_v26  ;;  %1095 = vmatpush1.msra.mxu0 %v1039_v29  ;;  %v3012_v26 = vld [vmem:[#allocation2 + $0xd] sm:$0xff] }
  0xf2   :  { %2589 = vmatprep.subr.mxu1 %v566_v30  ;;  %1096 = vmatprep.subr.mxu0 %v1037_v31  ;;  %v1050_v29 = vld [vmem:[#allocation7 + $0x4d8] sm:$0xff]  ;;  %v1047_v31 = vld [vmem:[#allocation7 + $0x4c0] sm:$0xff] }
  0xf3   :  { %2590 = vmatpush3.msra.mxu1 %v566_v30  ;;  %1097 = vmatpush1.msra.mxu0 %v1036_v32  ;;  %v1520_v30 = vld [vmem:[#allocation7 + $0x6d8] sm:$0xff]  ;;  %v3019_v32 = vld [vmem:[#allocation2 + $0x1d] sm:$0xff] }
  0xf4   :  { %2591 = vmatprep.subr.mxu1 %v563_v33  ;;  %1098 = vmatprep.subr.mxu0 %v1034_v34  ;;  %v1044_v34 = vld [vmem:[#allocation7 + $0x4a8] sm:$0xff] }
  0xf5   :  { %2592 = vmatpush3.msra.mxu1 %v563_v33  ;;  %1099 = vmatpush1.msra.mxu0 %v1033_v35  ;;  %v1517_v33 = vld [vmem:[#allocation7 + $0x6c0] sm:$0xff]  ;;  %v1515_v35 = vld [vmem:[#allocation7 + $0x6b0] sm:$0xff] }
  0xf6   :  { %2593 = vmatprep.subr.mxu1 %v560_v36  ;;  %1100 = vmatprep.subr.mxu0 %v1031_v37  ;;  %v1041_v37 = vld [vmem:[#allocation7 + $0x490] sm:$0xff] }
  0xf7   :  { %2594 = vmatpush3.msra.mxu1 %v560_v36  ;;  %1101 = vmatpush1.msra.mxu0 %v1030_v38  ;;  %v1514_v36 = vld [vmem:[#allocation7 + $0x6a8] sm:$0xff]  ;;  %v1512_v38 = vld [vmem:[#allocation7 + $0x698] sm:$0xff] }
  0xf8   :  { %2595 = vmatprep.subr.mxu1 %v557_v39  ;;  %1102 = vmatprep.subr.mxu0 %v1028_v41  ;;  %v1511_v41 = vld [vmem:[#allocation7 + $0x690] sm:$0xff] }
  0xf9   :  { %2596 = vmatpush3.msra.mxu1 %v557_v39  ;;  %1103 = vmatpush1.msra.mxu0 %v1027_v42  ;;  %v3024_v39 = vld [vmem:[#allocation2 + $0x25] sm:$0xff] }
  0xfa   :  { %1136 = vmatprep.mubr.f32.mxu0 %v3429_v0  ;;  %2598 = vmatmul.mubr.msk.f32.vlgmr.msra.gmra.mxu1 %vm177_vm4, %v2928_v40  ;;  %v1288_v40 = vld [vmem:[#allocation7 + $0x5f0] sm:$0xff]  ;;  %v1038_v42 = vld [vmem:[#allocation7 + $0x478] sm:$0xff] }
  0xfb   :  { %2603 = vmatprep.subr.mxu1 %v823_v43  ;;  %2377 = vmatmul.mubr.msk.f32.vlgmr.msra.gmra.mxu0 %vm177_vm4, %v2975_v45 }
  0xfc   :  { %1318 = vmatprep.subr.mxu0 %v1294_v44  ;;  %2600 = vmatprep.mubr.msk.f32.mxu1 %vm177_vm4, %v2935_v47  ;;  %v1285_v47 = vld [vmem:[#allocation7 + $0x5d8] sm:$0xff] }
  0xfd   :  { %2604 = vmatpush3.msra.mxu1 %v823_v43  ;;  %1319 = vmatpush1.msra.mxu0 %v1293_v46  ;;  %v1509_v43 = vld [vmem:[#allocation7 + $0x680] sm:$0xff]  ;;  %v1508_v44 = vld [vmem:[#allocation7 + $0x678] sm:$0xff]  ;;  %v1506_v46 = vld [vmem:[#allocation7 + $0x668] sm:$0xff] }
  0xfe   :  { %2605 = vmatprep.subr.mxu1 %v820_v48  ;;  %1320 = vmatprep.subr.mxu0 %v1291_v49  ;;  %v1032_v49 = vld [vmem:[#allocation7 + $0x448] sm:$0xff] }
  0xff   :  { %2606 = vmatpush3.msra.mxu1 %v820_v48  ;;  %1142 = vmatprep.mubr.f32.mxu0 %v3429_v0  ;;  %v1505_v48 = vld [vmem:[#allocation7 + $0x660] sm:$0xff] }
 0x100   :  { %1321 = vmatpush1.msra.mxu0 %v1290_v50  ;;  %2601 = vmatmul.mubr.msk.f32.gmra.mxu1 %vm177_vm4, %v2940_v54  ;;  %v1282_v54 = vld [vmem:[#allocation7 + $0x5c0] sm:$0xff]  ;;  %v1503_v50 = vld [vmem:[#allocation7 + $0x650] sm:$0xff] }
 0x101   :  { %2607 = vmatprep.subr.mxu1 %v817_v51  ;;  %2378 = vmatmul.mubr.msk.f32.gmra.mxu0 %vm177_vm4, %v2984_v52 }
 0x102   :  { %1322 = vmatprep.subr.mxu0 %v1288_v40  ;;  %2608 = vmatpush3.msra.mxu1 %v817_v51  ;;  %v1502_v51 = vld [vmem:[#allocation7 + $0x648] sm:$0xff]  ;;  %v1029_v40 = vld [vmem:[#allocation7 + $0x430] sm:$0xff] }
 0x103   :  { %2625 = vmatprep.mubr.msk.f32.mxu1 %vm177_vm4, %v2947_v8  ;;  %1323 = vmatpush1.msra.mxu0 %v1287_v53  ;;  %v799_v8 = vld [vmem:[#allocation7 + $0x358] sm:$0xff] }
 0x104   :  { %2609 = vmatprep.subr.mxu1 %v814_v55  ;;  %1324 = vmatprep.subr.mxu0 %v1285_v47  ;;  %v1500_v53 = vld [vmem:[#allocation7 + $0x638] sm:$0xff]  ;;  %v1295_v47 = vld [vmem:[#allocation7 + $0x628] sm:$0xff] }
 0x105   :  { %2610 = vmatpush3.msra.mxu1 %v814_v55  ;;  %1148 = vmatprep.mubr.f32.mxu0 %v3429_v0  ;;  %v1499_v55 = vld [vmem:[#allocation7 + $0x630] sm:$0xff] }
 0x106   :  { %1325 = vmatpush1.msra.mxu0 %v1284_v56  ;;  %2611 = vmatprep.subr.mxu1 %v811_v57  ;;  %v1494_v56 = vld [vmem:[#allocation2 + $0x6] sm:$0xff] }
 0x107   :  { %2379 = vmatmul.mubr.msk.f32.gmra.mxu0 %vm177_vm4, %v2991_v58  ;;  %1326 = vmatprep.subr.mxu0 %v1282_v54  ;;  %v1289_v54 = vld [vmem:[#allocation7 + $0x5f8] sm:$0xff] }
 0x108   :  { %2612 = vmatpush3.msra.mxu1 %v811_v57  ;;  %1327 = vmatpush1.msra.mxu0 %v1281_v59  ;;  %v1292_v57 = vld [vmem:[#allocation7 + $0x610] sm:$0xff]  ;;  %v1286_v59 = vld [vmem:[#allocation7 + $0x5e0] sm:$0xff] }
 0x109   :  { %2613 = vmatprep.subr.mxu1 %v808_v60  ;;  %1328 = vmatprep.subr.mxu0 %v1279_v61  ;;  %v1496_v61 = vld [vmem:[#allocation2 + $0x1e] sm:$0xff] }
 0x10a   :  { %2614 = vmatpush3.msra.mxu1 %v808_v60  ;;  %1154 = vmatprep.mubr.f32.mxu0 %v3429_v0  ;;  %v1280_v60 = vld [vmem:[#allocation7 + $0x5b0] sm:$0xff] }
 0x10b   :  { %1329 = vmatpush1.msra.mxu0 %v1278_v62  ;;  %2615 = vmatprep.subr.mxu1 %v805_v63  ;;  %v1277_v62 = vld [vmem:[#allocation7 + $0x598] sm:$0xff] }
 0x10c   :  { %2380 = vmatmul.mubr.msk.f32.gmra.mxu0 %vm177_vm4, %v2996_v3  ;;  %1330 = vmatprep.subr.mxu0 %v1276_v2  ;;  %v1497_v2 = vld [vmem:[#allocation2 + $0x26] sm:$0xff] }
 0x10d   :  { %2616 = vmatpush3.msra.mxu1 %v805_v63  ;;  %1331 = vmatpush1.msra.mxu0 %v1275_v4  ;;  %v1274_v63 = vld [vmem:[#allocation7 + $0x580] sm:$0xff]  ;;  %v1268_v4 = vld [vmem:[#allocation7 + $0x550] sm:$0xff] }
 0x10e   :  { %2617 = vmatprep.subr.mxu1 %v802_v5  ;;  %1332 = vmatprep.subr.mxu0 %v1273_v6  ;;  %v1531_v6 = vld [vmem:[#allocation7 + $0x730] sm:$0xff] }
 0x10f   :  { %2618 = vmatpush3.msra.mxu1 %v802_v5  ;;  %1333 = vmatpush1.msra.mxu0 %v1272_v7  ;;  %v1265_v5 = vld [vmem:[#allocation7 + $0x538] sm:$0xff] }
 0x110   :  { %2619 = vmatprep.subr.mxu1 %v799_v8  ;;  %1334 = vmatprep.subr.mxu0 %v1270_v10  ;;  %v1528_v7 = vld [vmem:[#allocation7 + $0x718] sm:$0xff]  ;;  %v1522_v10 = vld [vmem:[#allocation7 + $0x6e8] sm:$0xff] }
 0x111   :  { %2620 = vmatpush3.msra.mxu1 %v799_v8  ;;  %1335 = vmatpush1.msra.mxu0 %v1269_v11  ;;  %v1525_v8 = vld [vmem:[#allocation7 + $0x700] sm:$0xff]  ;;  %v1519_v11 = vld [vmem:[#allocation7 + $0x6d0] sm:$0xff] }
 0x112   :  { %2621 = vmatprep.subr.mxu1 %v796_v12  ;;  %1336 = vmatprep.subr.mxu0 %v1267_v13  ;;  %v1513_v13 = vld [vmem:[#allocation7 + $0x6a0] sm:$0xff] }
 0x113   :  { %2622 = vmatpush3.msra.mxu1 %v796_v12  ;;  %1337 = vmatpush1.msra.mxu0 %v1266_v14  ;;  %v1516_v12 = vld [vmem:[#allocation7 + $0x6b8] sm:$0xff]  ;;  %v1510_v14 = vld [vmem:[#allocation7 + $0x688] sm:$0xff] }
 0x114   :  { %2623 = vmatprep.subr.mxu1 %v793_v1  ;;  %1338 = vmatprep.subr.mxu0 %v1264_v16  ;;  %v1504_v16 = vld [vmem:[#allocation7 + $0x658] sm:$0xff] }
 0x115   :  { %2624 = vmatpush3.msra.mxu1 %v793_v1  ;;  %1339 = vmatpush1.msra.mxu0 %v1263_v18  ;;  %v1507_v1 = vld [vmem:[#allocation7 + $0x670] sm:$0xff]  ;;  %v1501_v18 = vld [vmem:[#allocation7 + $0x640] sm:$0xff] }
 0x116   :  { %1372 = vmatprep.mubr.f32.mxu0 %v3429_v0  ;;  %2626 = vmatmul.mubr.msk.f32.vlgmr.msra.gmra.mxu1 %vm177_vm4, %v2956_v15  ;;  %v1524_v15 = vld [vmem:[#allocation7 + $0x6f8] sm:$0xff] }
 0x117   :  { %2631 = vmatprep.subr.mxu1 %v1059_v9  ;;  %2385 = vmatmul.mubr.msk.f32.vlgmr.msra.gmra.mxu0 %vm177_vm4, %v3003_v20 }
 0x118   :  { %1554 = vmatprep.subr.mxu0 %v1530_v19  ;;  %2628 = vmatprep.mubr.msk.f32.mxu1 %vm177_vm4, %v2963_v21  ;;  %v1521_v21 = vld [vmem:[#allocation7 + $0x6e0] sm:$0xff] }
 0x119   :  { %2632 = vmatpush3.msra.mxu1 %v1059_v9  ;;  %1555 = vmatpush1.msra.mxu0 %v1529_v17 }
 0x11a   :  { %2633 = vmatprep.subr.mxu1 %v1056_v22  ;;  %1556 = vmatprep.subr.mxu0 %v1527_v23  ;;  %v1732_v23 = vlaneseq }
 0x11b   :  { %2634 = vmatpush3.msra.mxu1 %v1056_v22  ;;  %1378 = vmatprep.mubr.f32.mxu0 %v3429_v0 }
 0x11c   :  { %1557 = vmatpush1.msra.mxu0 %v1526_v24  ;;  %2629 = vmatmul.mubr.msk.f32.gmra.mxu1 %vm177_vm4, %v2968_v28  ;;  %v1518_v28 = vld [vmem:[#allocation7 + $0x6c8] sm:$0xff]  ;;  %vm1793_vm5 = vcmp.lt.s32.totalorder %v1732_v23, 144 }
 0x11d   :  { %2635 = vmatprep.subr.mxu1 %v1053_v25  ;;  %2386 = vmatmul.mubr.msk.f32.gmra.mxu0 %vm177_vm4, %v3012_v26  ;;  %1795 = vst.msk [vmem:[#allocation3] ss:$8 sm:$0x3] %vm1793_vm5, %v3429_v0  ;;  %1798 = vst.msk [vmem:[#allocation3 + $0x30] ss:$8 sm:$0x3] %vm1793_vm5, %v3429_v0 }
 0x11e   :  { %1558 = vmatprep.subr.mxu0 %v1524_v15  ;;  %2636 = vmatpush3.msra.mxu1 %v1053_v25  ;;  %1801 = vst.msk [vmem:[#allocation3 + $0x21] ss:$8 sm:$0x3] %vm1793_vm5, %v3429_v0  ;;  %1804 = vst.msk [vmem:[#allocation3 + $0x51] ss:$8 sm:$0x3] %vm1793_vm5, %v3429_v0 }
 0x11f   :  { %2653 = vmatprep.mubr.msk.f32.mxu1 %vm177_vm4, %v2975_v45  ;;  %1559 = vmatpush1.msra.mxu0 %v1523_v27  ;;  %v1035_v45 = vld [vmem:[#allocation7 + $0x460] sm:$0xff] }
 0x120   :  { %2637 = vmatprep.subr.mxu1 %v1050_v29  ;;  %1560 = vmatprep.subr.mxu0 %v1521_v21 }
 0x121   :  { %2638 = vmatpush3.msra.mxu1 %v1050_v29  ;;  %1384 = vmatprep.mubr.f32.mxu0 %v3429_v0 }
 0x122   :  { %1561 = vmatpush1.msra.mxu0 %v1520_v30  ;;  %2639 = vmatprep.subr.mxu1 %v1047_v31 }
 0x123   :  { %2387 = vmatmul.mubr.msk.f32.gmra.mxu0 %vm177_vm4, %v3019_v32  ;;  %1562 = vmatprep.subr.mxu0 %v1518_v28 }
 0x124   :  { %2640 = vmatpush3.msra.mxu1 %v1047_v31  ;;  %1563 = vmatpush1.msra.mxu0 %v1517_v33 }
 0x125   :  { %2641 = vmatprep.subr.mxu1 %v1044_v34  ;;  %1564 = vmatprep.subr.mxu0 %v1515_v35 }
 0x126   :  { %2642 = vmatpush3.msra.mxu1 %v1044_v34  ;;  %1390 = vmatprep.mubr.f32.mxu0 %v3429_v0 }
 0x127   :  { %1565 = vmatpush1.msra.mxu0 %v1514_v36  ;;  %2643 = vmatprep.subr.mxu1 %v1041_v37 }
 0x128   :  { %2388 = vmatmul.mubr.msk.f32.gmra.mxu0 %vm177_vm4, %v3024_v39  ;;  %1566 = vmatprep.subr.mxu0 %v1512_v38 }
 0x129   :  { %2644 = vmatpush3.msra.mxu1 %v1041_v37  ;;  %1567 = vmatpush1.msra.mxu0 %v1511_v41 }
 0x12a   :  { %2645 = vmatprep.subr.mxu1 %v1038_v42  ;;  %1568 = vmatprep.subr.mxu0 %v1509_v43 }
 0x12b   :  { %2646 = vmatpush3.msra.mxu1 %v1038_v42  ;;  %1569 = vmatpush1.msra.mxu0 %v1508_v44  ;;  %v1891_v44 = vld [vmem:[#allocation9 + $0x78] sm:$0xff] }
 0x12c   :  { %2647 = vmatprep.subr.mxu1 %v1035_v45  ;;  %1570 = vmatprep.subr.mxu0 %v1506_v46  ;;  %v1955_v46 = vld [vmem:[#allocation9 + $0x108] sm:$0xff] }
 0x12d   :  { %2648 = vmatpush3.msra.mxu1 %v1035_v45  ;;  %1571 = vmatpush1.msra.mxu0 %v1505_v48  ;;  %v1890_v45 = vld [vmem:[#allocation9 + $0x70] sm:$0xff]  ;;  %v1954_v48 = vld [vmem:[#allocation9 + $0x100] sm:$0xff] }
 0x12e   :  { %2649 = vmatprep.subr.mxu1 %v1032_v49  ;;  %1572 = vmatprep.subr.mxu0 %v1503_v50 }
 0x12f   :  { %2650 = vmatpush3.msra.mxu1 %v1032_v49  ;;  %1573 = vmatpush1.msra.mxu0 %v1502_v51  ;;  %v1889_v51 = vld [vmem:[#allocation9 + $0x68] sm:$0xff] }
 0x130   :  { %2651 = vmatprep.subr.mxu1 %v1029_v40  ;;  %1574 = vmatprep.subr.mxu0 %v1500_v53 }
 0x131   :  { %2652 = vmatpush3.msra.mxu1 %v1029_v40  ;;  %1575 = vmatpush1.msra.mxu0 %v1499_v55  ;;  %v1953_v40 = vld [vmem:[#allocation9 + $0xf8] sm:$0xff]  ;;  %v1888_v55 = vld [vmem:[#allocation9 + $0x60] sm:$0xff] }
 0x132   :  { %1608 = vmatprep.mubr.f32.mxu0 %v3429_v0  ;;  %2654 = vmatmul.mubr.msk.f32.vlgmr.msra.gmra.mxu1 %vm177_vm4, %v2984_v52  ;;  %v3038_v52 = vld [vmem:[#allocation2 + $0xe] sm:$0xff] }
 0x133   :  { %2659 = vmatprep.subr.mxu1 %v1295_v47  ;;  %2393 = vmatmul.mubr.msk.f32.vlgmr.msra.gmra.mxu0 %vm177_vm4, %v1494_v56 }
 0x134   :  { %2656 = vmatprep.mubr.msk.f32.mxu1 %vm177_vm4, %v2991_v58  ;;  %2660 = vmatpush3.msra.mxu1 %v1295_v47  ;;  %v1283_v58 = vld [vmem:[#allocation7 + $0x5c8] sm:$0xff] }
 0x135   :  { %1614 = vmatprep.mubr.f32.mxu0 %v3429_v0  ;;  %2661 = vmatprep.subr.mxu1 %v1292_v57  ;;  %v1952_v47 = vld [vmem:[#allocation9 + $0xf0] sm:$0xff] }
 0x136   :  { %1967 = vmatprep.subr.mxu0 %v3429_v0  ;;  %2662 = vmatpush3.msra.mxu1 %v1292_v57 }
 0x137   :  { %2657 = vmatmul.mubr.msk.f32.gmra.mxu1 %vm177_vm4, %v2996_v3  ;;  %2663 = vmatprep.subr.mxu1 %v1289_v54  ;;  %v1271_v3 = vld [vmem:[#allocation7 + $0x568] sm:$0xff] }
 0x138   :  { %2394 = vmatmul.mubr.msk.f32.gmra.mxu0 %vm177_vm4, %v3038_v52  ;;  %2664 = vmatpush3.msra.mxu1 %v1289_v54  ;;  %v1887_v54 = vld [vmem:[#allocation9 + $0x58] sm:$0xff] }
 0x139   :  { %2681 = vmatprep.mubr.msk.f32.mxu1 %vm177_vm4, %v3003_v20  ;;  %2665 = vmatprep.subr.mxu1 %v1286_v59 }
 0x13a   :  { %2666 = vmatpush3.msra.mxu1 %v1286_v59  ;;  %1620 = vmatprep.mubr.f32.mxu0 %v3429_v0  ;;  %v1951_v59 = vld [vmem:[#allocation9 + $0xe8] sm:$0xff] }
 0x13b   :  { %2667 = vmatprep.subr.mxu1 %v1283_v58  ;;  %1968 = vmatpush1.msra.mxu0 %v1955_v46 }
 0x13c   :  { %2395 = vmatmul.mubr.msk.f32.gmra.mxu0 %vm177_vm4, %v1496_v61  ;;  %2668 = vmatpush3.msra.mxu1 %v1283_v58  ;;  %v1950_v58 = vld [vmem:[#allocation9 + $0xe0] sm:$0xff] }
 0x13d   :  { %2669 = vmatprep.subr.mxu1 %v1280_v60  ;;  %1626 = vmatprep.mubr.f32.mxu0 %v3429_v0 }
 0x13e   :  { %2670 = vmatpush3.msra.mxu1 %v1280_v60  ;;  %1969 = vmatprep.subr.mxu0 %v3429_v0 }
 0x13f   :  { %2671 = vmatprep.subr.mxu1 %v1277_v62  ;;  %1970 = vmatpush1.msra.mxu0 %v1954_v48 }
 0x140   :  { %2396 = vmatmul.mubr.msk.f32.gmra.mxu0 %vm177_vm4, %v1497_v2  ;;  %2672 = vmatpush3.msra.mxu1 %v1277_v62  ;;  %v1885_v62 = vld [vmem:[#allocation9 + $0x48] sm:$0xff] }
 0x141   :  { %2673 = vmatprep.subr.mxu1 %v1274_v63  ;;  %1971 = vmatprep.subr.mxu0 %v3429_v0 }
 0x142   :  { %2674 = vmatpush3.msra.mxu1 %v1274_v63  ;;  %1972 = vmatpush1.msra.mxu0 %v1953_v40  ;;  %v1949_v63 = vld [vmem:[#allocation9 + $0xd8] sm:$0xff] }
 0x143   :  { %2675 = vmatprep.subr.mxu1 %v1271_v3  ;;  %1973 = vmatprep.subr.mxu0 %v3429_v0 }
 0x144   :  { %2676 = vmatpush3.msra.mxu1 %v1271_v3  ;;  %1974 = vmatpush1.msra.mxu0 %v1952_v47  ;;  %v1948_v3 = vld [vmem:[#allocation9 + $0xd0] sm:$0xff] }
 0x145   :  { %2677 = vmatprep.subr.mxu1 %v1268_v4  ;;  %1975 = vmatprep.subr.mxu0 %v3429_v0 }
 0x146   :  { %2678 = vmatpush3.msra.mxu1 %v1268_v4  ;;  %1976 = vmatpush1.msra.mxu0 %v1951_v59 }
 0x147   :  { %2679 = vmatprep.subr.mxu1 %v1265_v5  ;;  %1977 = vmatprep.subr.mxu0 %v3429_v0 }
 0x148   :  { %2680 = vmatpush3.msra.mxu1 %v1265_v5  ;;  %1978 = vmatpush1.msra.mxu0 %v1950_v58 }
 0x149   :  { %2682 = vmatmul.mubr.msk.f32.vlgmr.msra.gmra.mxu1 %vm177_vm4, %v3012_v26  ;;  %2687 = vmatprep.subr.mxu1 %v1531_v6 }
 0x14a   :  { %2684 = vmatprep.mubr.msk.f32.mxu1 %vm177_vm4, %v3019_v32  ;;  %2688 = vmatpush3.msra.mxu1 %v1531_v6  ;;  %v1883_v6 = vld [vmem:[#allocation9 + $0x38] sm:$0xff] }
 0x14b   :  { %2689 = vmatprep.subr.mxu1 %v1528_v7  ;;  %1979 = vmatprep.subr.mxu0 %v3429_v0 }
 0x14c   :  { %2690 = vmatpush3.msra.mxu1 %v1528_v7  ;;  %1980 = vmatpush1.msra.mxu0 %v1949_v63  ;;  %v1947_v7 = vld [vmem:[#allocation9 + $0xc8] sm:$0xff] }
 0x14d   :  { %2685 = vmatmul.mubr.msk.f32.gmra.mxu1 %vm177_vm4, %v3024_v39  ;;  %2691 = vmatprep.subr.mxu1 %v1525_v8 }
 0x14e   :  { %2692 = vmatpush3.msra.mxu1 %v1525_v8  ;;  %2709 = vmatprep.mubr.msk.f32.mxu1 %vm177_vm4, %v1494_v56  ;;  %v1882_v8 = vld [vmem:[#allocation9 + $0x30] sm:$0xff] }
 0x14f   :  { %2693 = vmatprep.subr.mxu1 %v1522_v10  ;;  %1981 = vmatprep.subr.mxu0 %v3429_v0 }
 0x150   :  { %2694 = vmatpush3.msra.mxu1 %v1522_v10  ;;  %1982 = vmatpush1.msra.mxu0 %v1948_v3  ;;  %v1946_v10 = vld [vmem:[#allocation9 + $0xc0] sm:$0xff] }
 0x151   :  { %2695 = vmatprep.subr.mxu1 %v1519_v11  ;;  %1983 = vmatprep.subr.mxu0 %v3429_v0 }
 0x152   :  { %2696 = vmatpush3.msra.mxu1 %v1519_v11  ;;  %1984 = vmatpush1.msra.mxu0 %v1947_v7 }
 0x153   :  { %2697 = vmatprep.subr.mxu1 %v1516_v12  ;;  %1985 = vmatprep.subr.mxu0 %v3429_v0 }
 0x154   :  { %2698 = vmatpush3.msra.mxu1 %v1516_v12  ;;  %1986 = vmatpush1.msra.mxu0 %v1946_v10  ;;  %v3199_v10 = vshrl.u32 %v1732_v23, 7 }
 0x155   :  { %2699 = vmatprep.subr.mxu1 %v1513_v13  ;;  %1987 = vmatprep.subr.mxu0 %v3429_v0 }
 0x156   :  { %2700 = vmatpush3.msra.mxu1 %v1513_v13  ;;  %v1881_v13 = vld [vmem:[#allocation9 + $0x28] sm:$0xff] }
 0x157   :  { %2701 = vmatprep.subr.mxu1 %v1510_v14 }
 0x158   :  { %2702 = vmatpush3.msra.mxu1 %v1510_v14  ;;  %v1945_v14 = vld [vmem:[#allocation9 + $0xb8] sm:$0xff] }
 0x159   :  { %2703 = vmatprep.subr.mxu1 %v1507_v1  ;;  %1988 = vmatpush1.msra.mxu0 %v1945_v14 }
 0x15a   :  { %2704 = vmatpush3.msra.mxu1 %v1507_v1  ;;  %1989 = vmatprep.subr.mxu0 %v3429_v0 }
 0x15b   :  { %2705 = vmatprep.subr.mxu1 %v1504_v16 }
 0x15c   :  { %2706 = vmatpush3.msra.mxu1 %v1504_v16  ;;  %v1880_v16 = vld [vmem:[#allocation9 + $0x20] sm:$0xff] }
 0x15d   :  { %2707 = vmatprep.subr.mxu1 %v1501_v18 }
 0x15e   :  { %2708 = vmatpush3.msra.mxu1 %v1501_v18  ;;  %v1944_v18 = vld [vmem:[#allocation9 + $0xb0] sm:$0xff] }
 0x15f   :  { %2710 = vmatmul.mubr.msk.f32.vlgmr.msra.gmra.mxu1 %vm177_vm4, %v3038_v52  ;;  %2062 = vmatprep.subr.mxu1 %v3429_v0  ;;  %v1886_v52 = vld [vmem:[#allocation9 + $0x50] sm:$0xff] }
 0x160   :  { %2712 = vmatprep.mubr.msk.f32.mxu1 %vm177_vm4, %v1496_v61  ;;  %2063 = vmatpush1.msra.mxu1 %v1891_v44 }
 0x161   :  { %2064 = vmatprep.subr.mxu1 %v3429_v0  ;;  %1990 = vmatpush1.msra.mxu0 %v1944_v18 }
 0x162   :  { %2065 = vmatpush1.msra.mxu1 %v1890_v45  ;;  %v1879_v45 = vld [vmem:[#allocation9 + $0x18] sm:$0xff]  ;;  %1991 = vmatprep.subr.mxu0 %v3429_v0 }
 0x163   :  { %2713 = vmatmul.mubr.msk.f32.gmra.mxu1 %vm177_vm4, %v1497_v2  ;;  %2066 = vmatprep.subr.mxu1 %v3429_v0  ;;  %v1884_v2 = vld [vmem:[#allocation9 + $0x40] sm:$0xff] }
 0x164   :  { %2067 = vmatpush1.msra.mxu1 %v1889_v51 }
 0x165   :  { %v3105_v37 = vpop.f32.mrf.mxu1  ;;  %2068 = vmatprep.subr.mxu1 %v3429_v0 }
 0x166   :  { %v3060_v9 = vpop.f32.mrf.mxu0  ;;  %2069 = vmatpush1.msra.mxu1 %v1888_v55 }
 0x167   :  { %v3109_v39 = vpop.f32.mrf.mxu1  ;;  %2070 = vmatprep.subr.mxu1 %v3429_v0 }
 0x168   :  { %v3062_v19 = vpop.f32.mrf.mxu0  ;;  %2071 = vmatpush1.msra.mxu1 %v1887_v54 }
 0x169   :  { %2072 = vmatprep.subr.mxu1 %v3429_v0  ;;  %v445_v14 = vadd.f32 %v3062_v19, %v3109_v39 }
 0x16a   :  { %2073 = vmatpush1.msra.mxu1 %v1886_v52 }
 0x16b   :  { %v3113_v42 = vpop.f32.mrf.mxu1  ;;  %2074 = vmatprep.subr.mxu1 %v3429_v0 }
 0x16c   :  { %v3064_v20 = vpop.f32.mrf.mxu0  ;;  %2075 = vmatpush1.msra.mxu1 %v1885_v62 }
 0x16d   :  { %v3123_v49 = vpop.f32.mrf.mxu1  ;;  %2076 = vmatprep.subr.mxu1 %v3429_v0 }
 0x16e   :  { %v3066_v17 = vpop.f32.mrf.mxu0  ;;  %2077 = vmatpush1.msra.mxu1 %v1884_v2 }
 0x16f   :  { %2078 = vmatprep.subr.mxu1 %v3429_v0 }
 0x170   :  { %2079 = vmatpush1.msra.mxu1 %v1883_v6 }
 0x171   :  { %v3133_v56 = vpop.f32.mrf.mxu1  ;;  %2080 = vmatprep.subr.mxu1 %v3429_v0 }
 0x172   :  { %v3068_v22 = vpop.f32.mrf.mxu0  ;;  %2081 = vmatpush1.msra.mxu1 %v1882_v8  ;;  %v443_v8 = vadd.f32 %v3060_v9, %v3105_v37  ;;  %v449_v9 = vadd.f32 %v3064_v20, %v3113_v42  ;;  %v3218_v37 = vld [vmem:[%s3426_s3] sm:$0x7] }
 0x173   :  { %v3141_v60 = vpop.f32.mrf.mxu1  ;;  %2082 = vmatprep.subr.mxu1 %v3429_v0 }
 0x174   :  { %v3070_v24 = vpop.f32.mrf.mxu0  ;;  %2083 = vmatpush1.msra.mxu1 %v1881_v13 }
 0x175   :  { %2084 = vmatprep.subr.mxu1 %v3429_v0 }
 0x176   :  { %2085 = vmatpush1.msra.mxu1 %v1880_v16 }
 0x177   :  { %v3149_v4 = vpop.f32.mrf.mxu1  ;;  %2086 = vmatprep.subr.mxu1 %v3429_v0 }
 0x178   :  { %v3077_v25 = vpop.f32.mrf.mxu0  ;;  %2087 = vmatpush1.msra.mxu1 %v1879_v45 }
 0x179   :  { %v3157_v11 = vpop.f32.mrf.mxu1  ;;  %2088 = vmatprep.subr.mxu1 %v3429_v0 }
 0x17a   :  { %v3079_v15 = vpop.f32.mrf.mxu0 }
 0x182   :  { %v3163_v1 = vpop.f32.mrf.mxu1 }
 0x183   :  { %v3081_v26 = vpop.f32.mrf.mxu0 }
 0x184   :  { %v3171_v46 = vpop.f32.mrf.mxu1  ;;  %v774_v16 = vadd.f32 %v3081_v26, %v443_v8 }
 0x185   :  { %v3083_v27 = vpop.f32.mrf.mxu0 }
 0x186   :  { %v775_v45 = vadd.f32 %v3083_v27, %v445_v14  ;;  %v1738_v27 = vsub.s32 1, %v3199_v10 }
 0x188   :  { %v3178_v51 = vpop.f32.mrf.mxu1 }
 0x189   :  { %v3085_v29 = vpop.f32.mrf.mxu0 }
 0x18a   :  { %v3182_v55 = vpop.f32.mrf.mxu1  ;;  %v777_v39 = vadd.f32 %v3085_v29, %v449_v9 }
 0x18b   :  { %v3087_v21 = vpop.f32.mrf.mxu0 }
 0x18f   :  { %v3089_v30 = vpop.f32.mrf.mxu0 }
 0x191   :  { %v3091_v31 = vpop.f32.mrf.mxu0 }
 0x194   :  { %v3093_v28 = vpop.f32.mrf.mxu0 }
 0x196   :  { %v3095_v32 = vpop.f32.mrf.mxu0 }
 0x19e   :  { %v3184_v54 = vpop.f32.mrf.mxu1 }
 0x19f   :  { %v3097_v33 = vpop.f32.mrf.mxu0 }
 0x1a0   :  { %v3186_v52 = vpop.f32.mrf.mxu1  ;;  %v1010_v0 = vadd.f32 %v3097_v33, %v774_v16  ;;  %v451_v33 = vadd.f32 %v3066_v17, %v3123_v49 }
 0x1a1   :  { %v3099_v34 = vpop.f32.mrf.mxu0 }
 0x1a2   :  { %v1011_v19 = vadd.f32 %v3099_v34, %v775_v45  ;;  %v455_v34 = vadd.f32 %v3068_v22, %v3133_v56  ;;  %v3239_v45 = vrot.slane %v3218_v37, %v1738_v27  ;;  %v461_v56 = vadd.f32 %v3077_v25, %v3149_v4 }
 0x1a4   :  { %v3188_v62 = vpop.f32.mrf.mxu1 }
 0x1a5   :  { %v3101_v35 = vpop.f32.mrf.mxu0 }
 0x1a6   :  { %v3190_v2 = vpop.f32.mrf.mxu1 }
 0x1a7   :  { %v3103_v36 = vpop.f32.mrf.mxu0  ;;  %3431 = vst [vmem:[#allocation14_spill] sm:$0xff] %v3190_v2  ;;  %v1734_v2 = vsub.s32 0, %v3199_v10 }
 0x1a9   :  { %v3230_v14 = vrot.slane %v3218_v37, %v1734_v2 }
 0x1ab   :  { %v3107_v38 = vpop.f32.mrf.mxu0 }
 0x1ad   :  { %v3111_v41 = vpop.f32.mrf.mxu0 }
 0x1b0   :  { %v3115_v43 = vpop.f32.mrf.mxu0 }
 0x1b2   :  { %v3125_v50 = vpop.f32.mrf.mxu0 }
 0x1ba   :  { %v3192_v6 = vpop.f32.mrf.mxu1 }
 0x1bb   :  { %v3129_v53 = vpop.f32.mrf.mxu0 }
 0x1bc   :  { %v3201_v13 = vpop.f32.mrf.mxu1  ;;  %v1246_v26 = vadd.f32 %v3129_v53, %v1010_v0  ;;  %v778_v0 = vadd.f32 %v3087_v21, %v451_v33  ;;  %v1013_v53 = vadd.f32 %v3101_v35, %v777_v39 }
 0x1bd   :  { %v3135_v57 = vpop.f32.mrf.mxu0 }
 0x1be   :  { %v1247_v20 = vadd.f32 %v3135_v57, %v1011_v19  ;;  %v457_v57 = vadd.f32 %v3070_v24, %v3141_v60  ;;  %v1014_v2 = vadd.f32 %v3103_v36, %v778_v0  ;;  %v783_v36 = vadd.f32 %v3093_v28, %v461_v56 }
 0x1c0   :  { %v3213_v23 = vpop.f32.mrf.mxu1  ;;  %v781_v19 = vadd.f32 %v3091_v31, %v457_v57  ;;  %v463_v31 = vadd.f32 %v3079_v15, %v3157_v11 }
 0x1c1   :  { %v3143_v61 = vpop.f32.mrf.mxu0 }
 0x1c2   :  { %v3236_v16 = vpop.f32.mrf.mxu1  ;;  %v1249_v22 = vadd.f32 %v3143_v61, %v1013_v53  ;;  %v1017_v33 = vadd.f32 %v3111_v41, %v781_v19  ;;  %v784_v41 = vadd.f32 %v3095_v32, %v463_v31 }
 0x1c3   :  { %v3151_v5 = vpop.f32.mrf.mxu0 }
 0x1c4   :  { %v1250_v24 = vadd.f32 %v3151_v5, %v1014_v2 }
 0x1c7   :  { %v3159_v12 = vpop.f32.mrf.mxu0 }
 0x1c9   :  { %v3167_v44 = vpop.f32.mrf.mxu0 }
 0x1ca   :  { %v1253_v28 = vadd.f32 %v3167_v44, %v1017_v33  ;;  %v1020_v44 = vadd.f32 %v3125_v50, %v784_v41  ;;  %v547_v41 = vadd.f32 %v3188_v62, %v3178_v51 }
 0x1cc   :  { %v3175_v48 = vpop.f32.mrf.mxu0 }
 0x1ce   :  { %v3180_v40 = vpop.f32.mrf.mxu0 }
 0x1d6   :  { %v3246_v21 = vpop.f32.mrf.mxu1 }
 0x1d7   :  { %v1374_v47 = vpop.f32.mrf.mxu0 }
 0x1d8   :  { %v1482_v42 = vadd.f32 %v1374_v47, %v1246_v26  ;;  %v780_v47 = vadd.f32 %v3089_v30, %v455_v34  ;;  %v3258_v4 = vpop.f32.mrf.mxu1 }
 0x1d9   :  { %v1376_v59 = vpop.f32.mrf.mxu0 }
 0x1da   :  { %v1483_v49 = vadd.f32 %v1376_v59, %v1247_v20  ;;  %v1016_v26 = vadd.f32 %v3107_v38, %v780_v47  ;;  %v1019_v38 = vadd.f32 %v3115_v43, %v783_v36 }
 0x1dc   :  { %v1252_v25 = vadd.f32 %v3159_v12, %v1016_v26  ;;  %v1255_v12 = vadd.f32 %v3175_v48, %v1019_v38 }
 0x1dd   :  { %v1380_v58 = vpop.f32.mrf.mxu0 }
 0x1de   :  { %v1485_v30 = vadd.f32 %v1380_v58, %v1249_v22  ;;  %v1256_v22 = vadd.f32 %v3180_v40, %v1020_v44 }
 0x1df   :  { %v1382_v63 = vpop.f32.mrf.mxu0 }
 0x1e0   :  { %v1486_v39 = vadd.f32 %v1382_v63, %v1250_v24 }
 0x1e3   :  { %v1386_v3 = vpop.f32.mrf.mxu0 }
 0x1e5   :  { %v3194_v7 = vpop.f32.mrf.mxu0 }
 0x1e6   :  { %v1489_v15 = vadd.f32 %v3194_v7, %v1253_v28 }
 0x1e8   :  { %v3206_v18 = vpop.f32.mrf.mxu0 }
 0x1e9   :  { %v1491_v47 = vadd.f32 %v3206_v18, %v1255_v12 }
 0x1ea   :  { %v3226_v8 = vpop.f32.mrf.mxu0 }
 0x1eb   :  { %v1492_v50 = vadd.f32 %v3226_v8, %v1256_v22 }
 0x1f3   :  { %v1610_v17 = vpop.f32.mrf.mxu0 }
 0x1f4   :  { %v1718_v29 = vadd.f32 %v1610_v17, %v1482_v42  ;;  %v1488_v42 = vadd.f32 %v1386_v3, %v1252_v25 }
 0x1f5   :  { %v1612_v35 = vpop.f32.mrf.mxu0 }
 0x1f6   :  { %v1747_v59 = vadd.f32 %v3230_v14, %v1718_v29  ;;  %v1719_v9 = vadd.f32 %v1612_v35, %v1483_v49  ;;  %v2630_v49 = vpop.f32.mrf.mxu1 }
 0x1f8   :  { %v1759_v60 = vmax.f32 %v1747_v59, 0.0  ;;  %v1748_v61 = vadd.f32 %v3239_v45, %v1719_v9  ;;  %v1616_v27 = vpop.f32.mrf.mxu0  ;;  %v1001_v7 = vpop.f32.mrf.mxu1 }
 0x1f9   :  { %v1721_v20 = vadd.f32 %v1616_v27, %v1485_v30 }
 0x1fa   :  { %v1760_v5 = vmax.f32 %v1748_v61, 0.0  ;;  %v1618_v58 = vpop.f32.mrf.mxu0  ;;  %v1771_v53 = vmin.f32 %v1759_v60, 6.0  ;;  %v2655_v30 = vpop.f32.mrf.mxu1 }
 0x1fb   :  { %v1750_v34 = vadd.f32 %v3230_v14, %v1721_v20  ;;  %v1722_v0 = vadd.f32 %v1618_v58, %v1486_v39 }
 0x1fc   :  { %v1772_v63 = vmin.f32 %v1760_v5, 6.0  ;;  %v1622_v17 = vpop.f32.mrf.mxu0  ;;  %v1227_v39 = vpop.f32.mrf.mxu1 }
 0x1fd   :  { %v1762_v11 = vmax.f32 %v1750_v34, 0.0  ;;  %v1751_v43 = vadd.f32 %v3239_v45, %v1722_v0  ;;  %v1724_v29 = vadd.f32 %v1622_v17, %v1488_v42  ;;  %v532_v0 = vadd.f32 %v3186_v52, %v3171_v46 }
 0x1fe   :  { %v1624_v3 = vpop.f32.mrf.mxu0  ;;  %v3270_v57 = vadd.f32 %v1772_v63, %v1771_v53  ;;  %v2658_v8 = vpop.f32.mrf.mxu1  ;;  %v1742_v17 = vsub.s32 2, %v3199_v10 }
 0x1ff   :  { %v1763_v32 = vmax.f32 %v1751_v43, 0.0  ;;  %v1753_v48 = vadd.f32 %v3230_v14, %v1724_v29  ;;  %v1725_v2 = vadd.f32 %v1624_v3, %v1489_v15  ;;  %v1774_v35 = vmin.f32 %v1762_v11, 6.0  ;;  %v3432_v15 = vld [vmem:[#allocation14_spill] sm:$0xff] }
 0x200   :  { %v1628_v56 = vpop.f32.mrf.mxu0  ;;  %v1237_v28 = vpop.f32.mrf.mxu1  ;;  %v776_v53 = vadd.f32 %v3201_v13, %v532_v0  ;;  %v542_v11 = vadd.f32 %v3432_v15, %v3182_v55  ;;  %v1743_v13 = vrot.slane %v3218_v37, %v1742_v17  ;;  %v1943_v37 = vld [vmem:[#allocation9 + $0xa8] sm:$0xff] }
 0x201   :  { %v1775_v59 = vmin.f32 %v1763_v32, 6.0  ;;  %v1765_v9 = vmax.f32 %v1753_v48, 0.0  ;;  %v1754_v19 = vadd.f32 %v3239_v45, %v1725_v2  ;;  %v1727_v26 = vadd.f32 %v1628_v56, %v1491_v47  ;;  %v1942_v2 = vld [vmem:[#allocation9 + $0xa0] sm:$0xff]  ;;  %1992 = vmatpush1.msra.mxu0 %v1943_v37  ;;  %v2202_v37 = vld [vmem:[#allocation9 + $0x188] sm:$0xff] }
 0x202   :  { %v1630_v24 = vpop.f32.mrf.mxu0  ;;  %v782_v52 = vadd.f32 %v3236_v16, %v542_v11  ;;  %v3433_v16 = vmov 0.0  }
 0x203   :  { %v3277_v36 = vadd.f32 %v1775_v59, %v1774_v35  ;;  %v1766_v18 = vmax.f32 %v1754_v19, 0.0  ;;  %v1756_v60 = vadd.f32 %v3230_v14, %v1727_v26  ;;  %v1728_v61 = vadd.f32 %v1630_v24, %v1492_v50  ;;  %1809 = vst.msk [vmem:[#allocation3 + $0x10] sm:$0xff] %vm1808_vm8, %v3433_v16  ;;  %1813 = vst.msk [vmem:[#allocation3 + $0x40] sm:$0xff] %vm1808_vm8, %v3433_v16  ;;  %v1876_v19 = vld [vmem:[#allocation9] sm:$0xff] }
 0x204   :  { %v1777_v27 = vmin.f32 %v1765_v9, 6.0  ;;  %v537_v14 = vadd.f32 %v3184_v54, %v3163_v1  ;;  %v785_v1 = vadd.f32 %v3213_v23, %v547_v41  ;;  %v1012_v54 = vadd.f32 %v3258_v4, %v776_v53  ;;  %v1878_v23 = vld [vmem:[#allocation9 + $0x10] sm:$0xff]  ;;  %1818 = vst.msk [vmem:[#allocation3 + $0x18] sm:$0xff] %vm1817_vm9, %v3433_v16  ;;  %1822 = vst.msk [vmem:[#allocation3 + $0x48] sm:$0xff] %vm1817_vm9, %v3433_v16 }
 0x205   :  { %v1778_v40 = vmin.f32 %v1766_v18, 6.0  ;;  %v1768_v33 = vmax.f32 %v1756_v60, 0.0  ;;  %v1757_v25 = vadd.f32 %v3239_v45, %v1728_v61  ;;  %v1018_v29 = vadd.f32 %v1001_v7, %v782_v52  ;;  %2089 = vmatpush1.msra.mxu1 %v1878_v23  ;;  %1811 = vst.msk [vmem:[#allocation3 + $0x20] sm:$0x1] %vm1810_vm10, %v3433_v16  ;;  %1814 = vst.msk [vmem:[#allocation3 + $0x50] sm:$0x1] %vm1810_vm10, %v3433_v16 }
 0x206   :  { %v779_v45 = vadd.f32 %v3192_v6, %v537_v14  ;;  %v1021_v6 = vadd.f32 %v2630_v49, %v785_v1  ;;  %v1248_v51 = vadd.f32 %v1227_v39, %v1012_v54  ;;  %v1877_v49 = vld [vmem:[#allocation9 + $0x8] sm:$0xff]  ;;  %2090 = vmatprep.subr.mxu1 %v3433_v16  ;;  %1820 = vst.msk [vmem:[#allocation3 + $0x28] sm:$0x1] %vm1819_vm11, %v3433_v16  ;;  %1823 = vst.msk [vmem:[#allocation3 + $0x58] sm:$0x1] %vm1819_vm11, %v3433_v16  ;;  %v1941_v18 = vld [vmem:[#allocation9 + $0x98] sm:$0xff] }
 0x207   :  { %v3281_v20 = vadd.f32 %v1778_v40, %v1777_v27  ;;  %v1769_v31 = vmax.f32 %v1757_v25, 0.0  ;;  %v1780_v38 = vmin.f32 %v1768_v33, 6.0  ;;  %v1254_v47 = vadd.f32 %v1237_v28, %v1018_v29  ;;  %1993 = vmatprep.subr.mxu0 %v3433_v16  ;;  %2091 = vmatpush1.msra.mxu1 %v1877_v49  ;;  %v1893_v60 = vld [vmem:[#allocation9 + $0x88] sm:$0xff]  ;;  %v1940_v61 = vld [vmem:[#allocation9 + $0x90] sm:$0xff]  ;;  %v1892_v39 = vld [vmem:[#allocation9 + $0x80] sm:$0xff] }
 0x208   :  { %v1015_v63 = vadd.f32 %v3246_v21, %v779_v45  ;;  %v1257_v21 = vadd.f32 %v2658_v8, %v1021_v6  ;;  %1994 = vmatpush1.msra.mxu0 %v1942_v2  ;;  %2092 = vmatprep.subr.mxu1 %v3433_v16  ;;  %v1957_v8 = vld [vmem:[#allocation9 + $0x118] sm:$0xff]  ;;  %v1956_v28 = vld [vmem:[#allocation9 + $0x110] sm:$0xff] }
 0x209   :  { %v1781_v5 = vmin.f32 %v1769_v31, 6.0  ;;  %v2683_v42 = vpop.f32.mrf.mxu1  ;;  %1995 = vmatprep.subr.mxu0 %v3433_v16  ;;  %2093 = vmatpush1.msra.mxu1 %v1876_v19  ;;  %v2203_v23 = vld [vmem:[#allocation9 + $0x190] sm:$0xff] }
 0x20a   :  { %v1251_v46 = vadd.f32 %v2655_v30, %v1015_v63  ;;  %1996 = vmatpush1.msra.mxu0 %v1941_v18  ;;  %2122 = vmatprep.subr.mxu1 %v3433_v16 }
 0x20b   :  { %v3283_v58 = vadd.f32 %v1781_v5, %v1780_v38  ;;  %v1463_v34 = vpop.f32.mrf.mxu1  ;;  %1997 = vmatprep.subr.mxu0 %v3433_v16  ;;  %2123 = vmatpush2.msra.mxu1 %v1893_v60 }
 0x20c   :  { %v1487_v62 = vadd.f32 %v2683_v42, %v1251_v46  ;;  %v1484_v10 = vadd.f32 %v1463_v34, %v1248_v51  ;;  %1998 = vmatpush1.msra.mxu0 %v1940_v61  ;;  %2124 = vmatprep.subr.mxu1 %v3433_v16  ;;  %v2200_v61 = vld [vmem:[#allocation9 + $0x178] sm:$0xff] }
 0x20d   :  { %v2686_v12 = vpop.f32.mrf.mxu1  ;;  %2027 = vmatprep.subr.mxu0 %v3433_v16  ;;  %2125 = vmatpush2.msra.mxu1 %v1892_v39 }
 0x20e   :  { %v1493_v55 = vadd.f32 %v2686_v12, %v1257_v21  ;;  %2028 = vmatpush2.msra.mxu0 %v1957_v8 }
 0x20f   :  { %v1473_v43 = vpop.f32.mrf.mxu1  ;;  %2029 = vmatprep.subr.mxu0 %v3433_v16 }
 0x210   :  { %v1490_v35 = vadd.f32 %v1473_v43, %v1254_v47  ;;  %2030 = vmatpush2.msra.mxu0 %v1956_v28  ;;  %v2197_v28 = vld [vmem:[#allocation9 + $0x160] sm:$0xff] }
 0x211   :  { %2215 = vmatprep.subr.mxu0 %v3433_v16 }
 0x21f   :  { %v2711_v44 = vpop.f32.mrf.mxu1 }
 0x220   :  { %v1723_v3 = vadd.f32 %v2711_v44, %v1487_v62  ;;  %v2204_v44 = vld [vmem:[#allocation9 + $0x198] sm:$0xff] }
 0x221   :  { %v1699_v32 = vpop.f32.mrf.mxu1 }
 0x222   :  { %v1752_v4 = vadd.f32 %v1743_v13, %v1723_v3  ;;  %v1720_v48 = vadd.f32 %v1699_v32, %v1484_v10 }
 0x223   :  { %v2714_v22 = vpop.f32.mrf.mxu1 }
 0x224   :  { %v1764_v56 = vmax.f32 %v1752_v4, 0.0  ;;  %v1749_v7 = vadd.f32 %v1743_v13, %v1720_v48  ;;  %v1729_v59 = vadd.f32 %v2714_v22, %v1493_v55 }
 0x225   :  { %v1709_v9 = vpop.f32.mrf.mxu1 }
 0x226   :  { %v1776_v26 = vmin.f32 %v1764_v56, 6.0  ;;  %v1761_v50 = vmax.f32 %v1749_v7, 0.0  ;;  %v1758_v24 = vadd.f32 %v1743_v13, %v1729_v59  ;;  %v1726_v30 = vadd.f32 %v1709_v9, %v1490_v35 }
 0x228   :  { %v1773_v27 = vmin.f32 %v1761_v50, 6.0  ;;  %v1770_v40 = vmax.f32 %v1758_v24, 0.0  ;;  %v1755_v33 = vadd.f32 %v1743_v13, %v1726_v30  ;;  %v1788_v25 = vadd.f32 %v3277_v36, %v1776_v26  ;;  %v2201_v26 = vld [vmem:[#allocation9 + $0x180] sm:$0xff] }
 0x22a   :  { %v1782_v31 = vmin.f32 %v1770_v40, 6.0  ;;  %v1767_v38 = vmax.f32 %v1755_v33, 0.0  ;;  %v1787_v5 = vadd.f32 %v3270_v57, %v1773_v27  ;;  %v1830_v34 = vrot.slane %v1788_v25, 7  ;;  %v2199_v25 = vld [vmem:[#allocation9 + $0x170] sm:$0xff] }
 0x22c   :  { %v1779_v42 = vmin.f32 %v1767_v38, 6.0  ;;  %v1829_v36 = vrot.slane %v1787_v5, 7  ;;  %v1790_v14 = vadd.f32 %v3283_v58, %v1782_v31  ;;  %v2198_v38 = vld [vmem:[#allocation9 + $0x168] sm:$0xff] }
 0x22e   :  { %1835 = vrot.lane.b32.xlu0 %v1829_v36, %s2816_s29  ;;  %v1831_v0 = vsel %vm1828_vm12, %v1829_v36, %v1830_v34  ;;  %v1789_v57 = vadd.f32 %v3281_v20, %v1779_v42  ;;  %v1833_v41 = vrot.slane %v1790_v14, 7  ;;  %v2196_v42 = vld [vmem:[#allocation9 + $0x158] sm:$0xff]  ;;  %v2195_v36 = vld [vmem:[#allocation9 + $0x150] sm:$0xff]  ;;  %v2193_v14 = vld [vmem:[#allocation9 + $0x140] sm:$0xff] }
 0x22f   :  { %1837 = vrot.lane.b32.xlu1 %v1831_v0, %s2816_s29  ;;  %v2192_v0 = vld [vmem:[#allocation9 + $0x138] sm:$0xff] }
 0x230   :  { %v1832_v45 = vrot.slane %v1789_v57, 7  ;;  %v2191_v57 = vld [vmem:[#allocation9 + $0x130] sm:$0xff] }
 0x232   :  { %1839 = vrot.lane.b32.xlu0 %v1830_v34, %s2816_s29  ;;  %v1834_v12 = vsel %vm1828_vm12, %v1832_v45, %v1833_v41  ;;  %v2194_v34 = vld [vmem:[#allocation9 + $0x148] sm:$0xff] }
 0x233   :  { %1841 = vrot.lane.b32.xlu1 %v1832_v45, %s2816_s29  ;;  %v2190_v45 = vld [vmem:[#allocation9 + $0x128] sm:$0xff] }
 0x236   :  { %1843 = vrot.lane.b32.xlu0 %v1834_v12, %s2816_s29 }
 0x237   :  { %1845 = vrot.lane.b32.xlu1 %v1833_v41, %s2816_s29  ;;  %v2189_v41 = vld [vmem:[#allocation9 + $0x120] sm:$0xff] }
 0x2a0   :  { %v1836_v58 = vpop.permute.xlu0 %1835 }
 0x2a1   :  { %1854 = vst.msk [vmem:[#allocation3] sm:$0xfe] %vm1853_vm13, %v1836_v58  ;;  %v1838_v20 = vpop.permute.xlu1 %1837 }
 0x2a2   :  { %1855 = vst.msk [vmem:[#allocation3 + $0x8] sm:$0xfe] %vm1806_vm6, %v1836_v58 }
 0x2a3   :  { %1857 = vst.msk [vmem:[#allocation3 + $0x10] sm:$0xff] %vm1856_vm14, %v1838_v20 }
 0x2a4   :  { %1858 = vst.msk [vmem:[#allocation3 + $0x18] sm:$0xff] %vm1808_vm8, %v1838_v20  ;;  %v1840_v53 = vpop.permute.xlu0 %1839  ;;  %v2206_v20 = vld [vmem:[#allocation9 + $0x1a8] sm:$0xff] }
 0x2a5   :  { %1860 = vst.msk [vmem:[#allocation3 + $0x20] sm:$0x1] %vm1859_vm15, %v1840_v53  ;;  %v1842_v63 = vpop.permute.xlu1 %1841 }
 0x2a6   :  { %1861 = vst.msk [vmem:[#allocation3 + $0x28] sm:$0x1] %vm1810_vm10, %v1840_v53 }
 0x2a7   :  { %1862 = vst.msk [vmem:[#allocation3 + $0x30] sm:$0xfe] %vm1853_vm13, %v1842_v63 }
 0x2a8   :  { %1863 = vst.msk [vmem:[#allocation3 + $0x38] sm:$0xfe] %vm1806_vm6, %v1842_v63  ;;  %v1844_v17 = vpop.permute.xlu0 %1843  ;;  %v1868_v11 = vld [vmem:[#allocation3] sm:$0xff] }
 0x2a9   :  { %v1869_v15 = vld [vmem:[#allocation3 + $0x8] sm:$0xff]  ;;  %1864 = vst.msk [vmem:[#allocation3 + $0x40] sm:$0xff] %vm1856_vm14, %v1844_v17  ;;  %v1846_v54 = vpop.permute.xlu1 %1845  ;;  %v1894_v43 = vld [vmem:[#allocation3] sm:$0xfe] }
 0x2aa   :  { %v1895_v1 = vld [vmem:[#allocation3 + $0x8] sm:$0xfe]  ;;  %1865 = vst.msk [vmem:[#allocation3 + $0x48] sm:$0xff] %vm1808_vm8, %v1844_v17  ;;  %2405 = vmatprep.mubr.msk.f32.mxu1 %vm1958_vm0, %v1869_v15  ;;  %v3346_v6 = vld [vmem:[#allocation3 + $0x10] sm:$0xff]  ;;  %v1915_v62 = vrot.slane %v1894_v43, 1  ;;  %v2205_v17 = vld [vmem:[#allocation9 + $0x1a0] sm:$0xff] }
 0x2ab   :  { %v3344_v46 = vld [vmem:[#allocation3 + $0x18] sm:$0xff]  ;;  %v1918_v52 = vrot.slane %v1895_v1, 1  ;;  %1866 = vst.msk [vmem:[#allocation3 + $0x50] sm:$0x1] %vm1859_vm15, %v1846_v54  ;;  %2127 = vmatmul.mubr.f32.vlgmr.msra.gmra.mxu1 %v1868_v11  ;;  %v1916_v13 = vrot.slane %v3346_v6, 1  ;;  %v2165_v63 = vrot.slane %v3346_v6, 2 }
 0x2ac   :  { %1867 = vst.msk [vmem:[#allocation3 + $0x58] sm:$0x1] %vm1810_vm10, %v1846_v54  ;;  %v1919_v51 = vrot.slane %v3344_v46, 1  ;;  %2406 = vmatprep.mubr.msk.f32.mxu1 %vm1958_vm0, %v3344_v46  ;;  %v1896_v3 = vld [vmem:[#allocation3 + $0x20] sm:$0x1]  ;;  %v2168_v33 = vrot.slane %v3344_v46, 2 }
 0x2ad   :  { %v1917_v21 = vsel %vm1914_vm1, %v1915_v62, %v1916_v13  ;;  %v1897_v10 = vld [vmem:[#allocation3 + $0x28] sm:$0x1]  ;;  %v1921_v32 = vrot.slane %v1896_v3, 1  ;;  %v2148_v60 = vld [vmem:[#allocation3 + $0x8] sm:$0xfc] }
 0x2ae   :  { %v1920_v29 = vsel %vm1914_vm1, %v1918_v52, %v1919_v51  ;;  %v1923_v55 = vrot.slane %v1897_v10, 1  ;;  %v1898_v22 = vld [vmem:[#allocation3 + $0x30] sm:$0xfe]  ;;  %v2167_v39 = vrot.slane %v2148_v60, 2  ;;  %v2147_v12 = vld [vmem:[#allocation3] sm:$0xfc] }
 0x2af   :  { %2401 = vmatprep.mubr.msk.f32.mxu0 %vm1958_vm0, %v1920_v29  ;;  %v1873_v47 = vld [vmem:[#allocation3 + $0x38] sm:$0xff]  ;;  %2132 = vmatmul.mubr.f32.gmra.mxu1 %v3346_v6  ;;  %v1922_v35 = vsel %vm1914_vm1, %v1916_v13, %v1921_v32  ;;  %v1872_v19 = vld [vmem:[#allocation3 + $0x30] sm:$0xff]  ;;  %v1925_v30 = vrot.slane %v1898_v22, 1  ;;  %v2150_v58 = vld [vmem:[#allocation3 + $0x28] sm:$0x3]  ;;  %v2164_v53 = vrot.slane %v2147_v12, 2 }
 0x2b0   :  { %2032 = vmatmul.mubr.f32.vlgmr.msra.gmra.mxu0 %v1917_v21  ;;  %v1899_v4 = vld [vmem:[#allocation3 + $0x38] sm:$0xfe]  ;;  %2407 = vmatprep.mubr.msk.f32.mxu1 %vm1958_vm0, %v1873_v47  ;;  %v1924_v48 = vsel %vm1914_vm1, %v1919_v51, %v1923_v55  ;;  %v3364_v2 = vld [vmem:[#allocation3 + $0x40] sm:$0xff]  ;;  %v2169_v8 = vsel %vm2163_vm2, %v2167_v39, %v2168_v33  ;;  %v2172_v15 = vrot.slane %v2150_v58, 2  ;;  %v2151_v13 = vld [vmem:[#allocation3 + $0x30] sm:$0xfc] }
 0x2b1   :  { %2216 = vmatpush1.msra.mxu0 %v2204_v44  ;;  %2402 = vmatprep.mubr.msk.f32.mxu0 %vm1958_vm0, %v1924_v48  ;;  %v3362_v49 = vld [vmem:[#allocation3 + $0x48] sm:$0xff]  ;;  %v1928_v7 = vrot.slane %v1899_v4, 1  ;;  %v1926_v59 = vrot.slane %v3364_v2, 1  ;;  %v2149_v11 = vld [vmem:[#allocation3 + $0x20] sm:$0x3]  ;;  %v2166_v1 = vsel %vm2163_vm2, %v2164_v53, %v2165_v63  ;;  %v2174_v3 = vrot.slane %v2151_v13, 2 }
 0x2b2   :  { %2217 = vmatprep.subr.mxu0 %v3433_v16  ;;  %v1929_v56 = vrot.slane %v3362_v49, 1  ;;  %v1900_v50 = vld [vmem:[#allocation3 + $0x50] sm:$0x1]  ;;  %v2170_v54 = vrot.slane %v2149_v11, 2  ;;  %v2152_v52 = vld [vmem:[#allocation3 + $0x38] sm:$0xfc]  ;;  %v2173_v6 = vsel %vm2163_vm2, %v2168_v33, %v2172_v15 }
 0x2b3   :  { %2218 = vmatpush1.msra.mxu0 %v2203_v23  ;;  %v1901_v9 = vld [vmem:[#allocation3 + $0x58] sm:$0x1]  ;;  %2137 = vmatmul.mubr.f32.gmra.mxu1 %v1872_v19  ;;  %v1927_v27 = vsel %vm1914_vm1, %v1925_v30, %v1926_v59  ;;  %v1931_v40 = vrot.slane %v1900_v50, 1  ;;  %v2178_v43 = vrot.slane %v3362_v49, 2  ;;  %v2177_v62 = vrot.slane %v2152_v52, 2 }
 0x2b4   :  { %2219 = vmatprep.subr.mxu0 %v3433_v16  ;;  %2037 = vmatmul.mubr.f32.gmra.mxu0 %v1922_v35  ;;  %v1930_v24 = vsel %vm1914_vm1, %v1928_v7, %v1929_v56  ;;  %v1933_v18 = vrot.slane %v1901_v9, 1  ;;  %v2154_v51 = vld [vmem:[#allocation3 + $0x58] sm:$0x3]  ;;  %v2171_v29 = vsel %vm2163_vm2, %v2165_v63, %v2170_v54  ;;  %v2153_v10 = vld [vmem:[#allocation3 + $0x50] sm:$0x3] }
 0x2b5   :  { %2220 = vmatpush1.msra.mxu0 %v2202_v37  ;;  %2408 = vmatprep.mubr.msk.f32.mxu1 %vm1958_vm0, %v3362_v49  ;;  %v1932_v5 = vsel %vm1914_vm1, %v1926_v59, %v1931_v40  ;;  %v2179_v21 = vsel %vm2163_vm2, %v2177_v62, %v2178_v43  ;;  %v2182_v44 = vrot.slane %v2154_v51, 2  ;;  %v2180_v47 = vrot.slane %v2153_v10, 2  ;;  %v2413_v60 = vld [vmem:[%s3427_s4] ss:$0 sm:$0xff]  ;;  %s2820_s4 = smov [#allocation10]  }
 0x2b6   :  { %2221 = vmatprep.subr.mxu0 %v3433_v16  ;;  %2403 = vmatprep.mubr.msk.f32.mxu0 %vm1958_vm0, %v1930_v24  ;;  %v1934_v31 = vsel %vm1914_vm1, %v1929_v56, %v1933_v18  ;;  %s2332_s13 = sshll.u32 %s2820_s4, 4  ;;  %s2333_s13 = int_to_ptr.vmem [resolvable:$true] %s2332_s13 }
 0x2b7   :  { %2222 = vmatpush1.msra.mxu0 %v2201_v26  ;;  %2142 = vmatmul.mubr.f32.gmra.mxu1 %v3364_v2  ;;  %v2183_v55 = vsel %vm2163_vm2, %v2178_v43, %v2182_v44  ;;  %s2785_s14 = scalar_lea.vmem %s2333_s13, 512  ;;  %p2790_p2 = scmp.lt.s32.totalorder %s2333_s13, %s2333_s13 }
 0x2b8   :  { %2223 = vmatprep.subr.mxu0 %v3433_v16  ;;  %2042 = vmatmul.mubr.f32.gmra.mxu0 %v1927_v27  ;;  %p2786_p1 = scmp.ne.s32.totalorder %s2333_s13, %s2785_s14  ;;  %p2791_p3 = scmp.lt.s32.totalorder %s2785_s14, %s2785_s14 }
 0x2b9   :  { %2224 = vmatpush1.msra.mxu0 %v2200_v61  ;;  %2404 = vmatprep.mubr.msk.f32.mxu0 %vm1958_vm0, %v1934_v31 }
 0x2ba   :  { %2225 = vmatprep.subr.mxu0 %v3433_v16  ;;  %p2792_p4 = por %p2791_p3, %p2790_p2 }
 0x2bb   :  { %2226 = vmatpush1.msra.mxu0 %v2199_v25 }
 0x2bc   :  { %2227 = vmatprep.subr.mxu0 %v3433_v16  ;;  %2047 = vmatmul.mubr.f32.gmra.mxu0 %v1932_v5  ;;  %p2793_p5 = pnand %p2792_p4, %p2786_p1 }
 0x2bd   :  { %2228 = vmatpush1.msra.mxu0 %v2198_v38  ;;  %2409 = vmatprep.mubr.msk.f32.mxu0 %vm1958_vm0, %v2169_v8 }
 0x2be   :  { %2229 = vmatprep.subr.mxu0 %v3433_v16 }
 0x2bf   :  { %2230 = vmatpush1.msra.mxu0 %v2197_v28 }
 0x2c0   :  { %2231 = vmatprep.subr.mxu0 %v3433_v16 }
 0x2c1   :  { %2232 = vmatpush1.msra.mxu0 %v2196_v42 }
 0x2c2   :  { %2233 = vmatprep.subr.mxu0 %v3433_v16 }
 0x2c3   :  { %2234 = vmatpush1.msra.mxu0 %v2195_v36 }
 0x2c4   :  { %2235 = vmatprep.subr.mxu0 %v3433_v16 }
 0x2c5   :  { %2236 = vmatpush1.msra.mxu0 %v2194_v34 }
 0x2c6   :  { %2237 = vmatprep.subr.mxu0 %v3433_v16 }
 0x2c7   :  { %2238 = vmatpush1.msra.mxu0 %v2193_v14 }
 0x2c8   :  { %2239 = vmatprep.subr.mxu0 %v3433_v16 }
 0x2c9   :  { %2240 = vmatpush1.msra.mxu0 %v2192_v0 }
 0x2ca   :  { %2241 = vmatprep.subr.mxu0 %v3433_v16 }
 0x2cb   :  { %2242 = vmatpush1.msra.mxu0 %v2191_v57 }
 0x2cc   :  { %2243 = vmatprep.subr.mxu0 %v3433_v16 }
 0x2cd   :  { %2244 = vmatpush1.msra.mxu0 %v2190_v45 }
 0x2ce   :  { %2245 = vmatprep.subr.mxu0 %v3433_v16 }
 0x2cf   :  { %2246 = vmatpush1.msra.mxu0 %v2189_v41 }
 0x2d0   :  { %2275 = vmatprep.subr.mxu0 %v3433_v16 }
 0x2d1   :  { %2276 = vmatpush2.msra.mxu0 %v2206_v20 }
 0x2d2   :  { %2277 = vmatprep.subr.mxu0 %v3433_v16  ;;  %v2175_v16 = vrot.slane %v3364_v2, 2 }
 0x2d3   :  { %2278 = vmatpush2.msra.mxu0 %v2205_v17 }
 0x2d4   :  { %2280 = vmatmul.mubr.f32.vlgmr.msra.gmra.mxu0 %v2166_v1  ;;  %v2176_v46 = vsel %vm2163_vm2, %v2174_v3, %v2175_v16  ;;  %v2181_v32 = vsel %vm2163_vm2, %v2175_v16, %v2180_v47 }
 0x2d5   :  { %2410 = vmatprep.mubr.msk.f32.mxu0 %vm1958_vm0, %v2173_v6 }
 0x2d8   :  { %2285 = vmatmul.mubr.f32.gmra.mxu0 %v2171_v29 }
 0x2d9   :  { %2411 = vmatprep.mubr.msk.f32.mxu0 %vm1958_vm0, %v2179_v21 }
 0x2dc   :  { %2290 = vmatmul.mubr.f32.gmra.mxu0 %v2176_v46 }
 0x2dd   :  { %2412 = vmatprep.mubr.msk.f32.mxu0 %vm1958_vm0, %v2183_v55 }
 0x2e0   :  { %2295 = vmatmul.mubr.f32.gmra.mxu0 %v2181_v32 }
 0x36b   :  { %v2128_v23 = vpop.f32.mrf.mxu1 }
 0x36d   :  { %v2130_v4 = vpop.f32.mrf.mxu1 }
 0x36f   :  { %v2133_v37 = vpop.f32.mrf.mxu1 }
 0x370   :  { %v2033_v48 = vpop.f32.mrf.mxu0 }
 0x371   :  { %v2135_v2 = vpop.f32.mrf.mxu1  ;;  %v2129_v30 = vadd.f32 %v2128_v23, %v2033_v48 }
 0x372   :  { %v2035_v49 = vpop.f32.mrf.mxu0 }
 0x373   :  { %v2138_v35 = vpop.f32.mrf.mxu1 }
 0x374   :  { %v2038_v22 = vpop.f32.mrf.mxu0 }
 0x375   :  { %v2140_v7 = vpop.f32.mrf.mxu1  ;;  %v2134_v40 = vadd.f32 %v2133_v37, %v2038_v22 }
 0x376   :  { %v2040_v56 = vpop.f32.mrf.mxu0 }
 0x377   :  { %v2143_v9 = vpop.f32.mrf.mxu1 }
 0x378   :  { %v2043_v59 = vpop.f32.mrf.mxu0 }
 0x379   :  { %v2145_v26 = vpop.f32.mrf.mxu1  ;;  %v2139_v5 = vadd.f32 %v2138_v35, %v2043_v59 }
 0x37a   :  { %v2045_v19 = vpop.f32.mrf.mxu0 }
 0x37c   :  { %v2048_v50 = vpop.f32.mrf.mxu0 }
 0x37d   :  { %v2144_v0 = vadd.f32 %v2143_v9, %v2048_v50 }
 0x37e   :  { %v2050_v24 = vpop.f32.mrf.mxu0 }
 0x394   :  { %v2281_v18 = vpop.f32.mrf.mxu0 }
 0x395   :  { %v2300_v61 = vadd.f32 %v2281_v18, %v2129_v30 }
 0x396   :  { %v2283_v27 = vpop.f32.mrf.mxu0 }
 0x397   :  { %v2311_v33 = vadd.f32 %v2413_v60, %v2300_v61 }
 0x398   :  { %v2286_v25 = vpop.f32.mrf.mxu0 }
 0x399   :  { %v2315_v39 = vmax.f32 %v2311_v33, 0.0  ;;  %v2301_v31 = vadd.f32 %v2286_v25, %v2134_v40 }
 0x39a   :  { %v2288_v38 = vpop.f32.mrf.mxu0 }
 0x39b   :  { %v2319_v8 = vmin.f32 %v2315_v39, 6.0  ;;  %v2312_v28 = vadd.f32 %v2413_v60, %v2301_v31 }
 0x39c   :  { %v2291_v42 = vpop.f32.mrf.mxu0 }
 0x39d   :  { %2323 = vst [vmem:[#allocation10] sm:$0xff] %v2319_v8  ;;  %v2316_v36 = vmax.f32 %v2312_v28, 0.0  ;;  %v2302_v34 = vadd.f32 %v2291_v42, %v2139_v5 }
 0x39e   :  { %v2293_v14 = vpop.f32.mrf.mxu0 }
 0x39f   :  { %v2320_v57 = vmin.f32 %v2316_v36, 6.0  ;;  %v2313_v45 = vadd.f32 %v2413_v60, %v2302_v34 }
 0x3a0   :  { %v2296_v41 = vpop.f32.mrf.mxu0 }
 0x3a1   :  { %2324 = vst [vmem:[#allocation10 + $0x8] sm:$0xff] %v2320_v57  ;;  %v2317_v12 = vmax.f32 %v2313_v45, 0.0  ;;  %v2303_v58 = vadd.f32 %v2296_v41, %v2144_v0 }
 0x3a2   :  { %v2298_v20 = vpop.f32.mrf.mxu0 }
 0x3a3   :  { %v2321_v53 = vmin.f32 %v2317_v12, 6.0  ;;  %v2314_v63 = vadd.f32 %v2413_v60, %v2303_v58 }
 0x3a5   :  { %2325 = vst [vmem:[#allocation10 + $0x10] sm:$0xff] %v2321_v53  ;;  %v2318_v17 = vmax.f32 %v2314_v63, 0.0 }
 0x3a7   :  { %v2322_v15 = vmin.f32 %v2318_v17, 6.0 }
 0x3a9   :  { %2326 = vst [vmem:[#allocation10 + $0x18] sm:$0xff] %v2322_v15 }
 0x3aa   :  { %2796 = shalt.err (!%p2793_p5)
}
 0x3ab   :  { %2338 = dma.vmem_to_hbm [thread:$0]  %s2333_s13, 512, %s3428_s5, [#allocation6], %s2815_s28, %s2815_s28, %s2816_s29  }
 0x3ac   :  { %2809 = dma.done.wait [#allocation6], 512  }
 0x3ad   :  { %2810 = vsyncadd [#allocation6], 4294966784 }
 0x3ae   :  { %2342 = vsyncpa [#allocation5], 1 }
 0x3af   :  { %2343 = vsyncpa [#allocation8], 1 }
 0x3b0   :  { %2344 = vsyncpa [#allocation6], 1 }

</bundles_post_ra>
